<compile_context>
chip_gen: v6e
topology: v6e:2x2x1
jax: 0.10.0
libtpu: 0.0.40
codegen_flags: <defaults>
</compile_context>

<pallas_src>
import functools

import jax
import jax.numpy as jnp
from jax import lax
from jax.experimental import pallas as pl
from jax.experimental.pallas import tpu as pltpu

EPS = 1e-5
_LANES = 128


def _round_up(x, m):
  return (x + m - 1) // m * m


def _tap_offsets(wp):
  # Flattened-index offsets of the 3x3 taps relative to the centre pixel,
  # ordered (kh outer, kw inner) to match the HWIO weight flattening.
  return tuple(dh * wp + dw for dh in (-1, 0, 1) for dw in (-1, 0, 1))


def _conv1_kernel(xf_ref, w_ref, mask_ref, h_ref, s_ref, *, p0, lk, offs, prec):
  """conv1 for one batch image + masked per-channel partial (sum, sumsq).

  xf_ref  : (1, C, lf)  zero-padded, row-flattened input (matmul dtype)
  w_ref   : (C, 9*C)    flattened conv1 weight (matmul dtype)
  mask_ref: (1, lk)     1.0 at valid output positions, 0.0 at wrap/pad junk
  h_ref   : (1, C, lk)  conv1 output (matmul dtype; stats taken on f32 first)
  s_ref   : (1, C, 2)   per-image [sum, sum_of_squares] over valid positions
  """
  # im2col-lite: 9 contiguous lane-slices stacked on sublanes -> one K=9C matmul.
  patches = jnp.concatenate(
      [xf_ref[0, :, p0 + off:p0 + off + lk] for off in offs], axis=0)  # (9C, lk)
  h = lax.dot_general(w_ref[...], patches,
                      dimension_numbers=(((1,), (0,)), ((), ())),
                      preferred_element_type=jnp.float32,
                      precision=prec)                                  # (C, lk) f32
  m = mask_ref[...]                                                    # (1, lk)
  hm = h * m
  # Stats from the f32 conv output (before the storage-dtype cast).
  s_ref[0] = jnp.concatenate(
      [jnp.sum(hm, axis=1, keepdims=True),
       jnp.sum(hm * h, axis=1, keepdims=True)], axis=1)                # (C, 2)
  h_ref[0] = h.astype(h_ref.dtype)


def _bn1_conv2_kernel(h1_ref, w_ref, mask_ref, sc_ref, h2_ref, s_ref, mid_ref,
                      *, p0, lk, lf, offs, prec):
  """Folded BN1 + ReLU, re-pad into VMEM scratch, conv2, masked partial stats."""
  C = h1_ref.shape[1]
  scale = sc_ref[0, :, 0:1]                                            # (C, 1)
  shift = sc_ref[0, :, 1:2]                                            # (C, 1)
  m = mask_ref[...]                                                    # (1, lk)
  # One fused scale/shift + ReLU pass in f32; the mask zeroes the wrap-around
  # junk so the scratch interior doubles as the zero padding conv2 needs.
  y = jnp.maximum(h1_ref[0].astype(jnp.float32) * scale + shift, 0.0) * m
  # Zero only the thin border strips of the scratch, not the whole buffer.
  mid_ref[:, :p0] = jnp.zeros((C, p0), mid_ref.dtype)
  mid_ref[:, p0 + lk:] = jnp.zeros((C, lf - p0 - lk), mid_ref.dtype)
  mid_ref[:, p0:p0 + lk] = y.astype(mid_ref.dtype)      # p0 is 128-aligned
  patches = jnp.concatenate(
      [mid_ref[:, p0 + off:p0 + off + lk] for off in offs], axis=0)    # (9C, lk)
  h2 = lax.dot_general(w_ref[...], patches,
                       dimension_numbers=(((1,), (0,)), ((), ())),
                       preferred_element_type=jnp.float32,
                       precision=prec)
  hm = h2 * m
  s_ref[0] = jnp.concatenate(
      [jnp.sum(hm, axis=1, keepdims=True),
       jnp.sum(hm * h2, axis=1, keepdims=True)], axis=1)
  h2_ref[0] = h2.astype(h2_ref.dtype)


def _bn2_residual_kernel(h2_ref, xr_ref, sc_ref, o_ref):
  """Folded BN2 + f32 residual add + final ReLU (lane-dense store)."""
  scale = sc_ref[0, :, 0:1]
  shift = sc_ref[0, :, 1:2]
  h2 = h2_ref[0].astype(jnp.float32)
  o_ref[0] = jnp.maximum(h2 * scale + shift + xr_ref[0], 0.0)


def _fold_bn(partials, gamma, beta, count):
  """Fold batch statistics into a single per-channel (scale, shift)."""
  s = jnp.sum(partials, axis=0)                    # (C, 2)
  mean = s[:, 0] / count
  # Single-pass biased variance (training-mode BN). Matches the reference; can
  # cancel when |mean| >> std, acceptable at the test tolerances used here.
  var = s[:, 1] / count - mean * mean
  scale = gamma.astype(jnp.float32) * lax.rsqrt(var + EPS)
  shift = beta.astype(jnp.float32) - mean * scale
  return jnp.stack([scale, shift], axis=1)[None]   # (1, C, 2) f32


def _vmem_limit_bytes():
  # Per-generation VMEM budget: leave headroom below physical capacity
  # (v7x: 64 MiB -> ~48 MiB, v5e/v6e: 128 MiB -> ~96 MiB).
  try:
    cap = int(pltpu.get_tpu_info().vmem_capacity_bytes)
  except Exception:
    cap = 64 * 1024 * 1024
  return min((cap * 3) // 4, 96 * 1024 * 1024)


@functools.partial(jax.jit, static_argnames=("matmul_dtype",))
def residual_block(x, w1, w2, g1, b1, g2, b2, *, matmul_dtype=jnp.bfloat16):
  """x: (N, C, H, W) f32 (NCHW). w1/w2: (3,3,C,C) HWIO. Returns (N, C, H, W)."""
  N, C, H, W = x.shape
  wp = W + 2                           # padded width
  lk = H * wp                          # flattened output range (incl. wrap junk)
  p0 = _round_up(wp + 1, _LANES)       # lane-aligned flat offset of output (0,0)
  lf = p0 + lk + wp + 1                # flattened padded length (all taps fit)
  offs = _tap_offsets(wp)
  prec = (lax.Precision.HIGHEST if matmul_dtype == jnp.float32
          else lax.Precision.DEFAULT)

  # conv1 input: zero-padded halo, row-flattened, stored in matmul dtype.
  # TODO(synk): replace this wrapper pad with in-kernel zero strips.
  xp = jnp.pad(x.astype(matmul_dtype), ((0, 0), (0, 0), (1, 1), (1, 1)))
  start = p0 - (wp + 1)                # flat offset of padded pixel (0, 0)
  xf = jnp.pad(xp.reshape(N, C, (H + 2) * wp),
               ((0, 0), (0, 0), (start, lf - start - (H + 2) * wp)))

  # f32 residual in the same lane-dense (C, lk) flat layout as the kernel outs.
  xr = jnp.pad(x, ((0, 0), (0, 0), (0, 0), (0, wp - W))).reshape(N, C, lk)

  # (C_out, 9*C_in) weights; row order matches the tap stacking order above.
  w1f = jnp.transpose(w1.reshape(9 * C, C)).astype(matmul_dtype)
  w2f = jnp.transpose(w2.reshape(9 * C, C)).astype(matmul_dtype)

  # Validity mask over the flattened output range (wrap-around columns = junk).
  mask = (jnp.arange(lk, dtype=jnp.int32) % wp < W).astype(jnp.float32)[None]

  cparams = pltpu.CompilerParams(
      dimension_semantics=("parallel",),           # megacore split on v7x
      vmem_limit_bytes=_vmem_limit_bytes())

  batch_spec = lambda *t: pl.BlockSpec((1,) + t, lambda n: (n,) + (0,) * len(t))
  const_spec = lambda *s: pl.BlockSpec(s, lambda n: (0,) * len(s))

  # ---- pass 1: conv1 + partial BN1 stats ------------------------------------
  h1, s1 = pl.pallas_call(
      functools.partial(_conv1_kernel, p0=p0, lk=lk, offs=offs, prec=prec),
      grid=(N,),
      in_specs=[batch_spec(C, lf), const_spec(C, 9 * C), const_spec(1, lk)],
      out_specs=[batch_spec(C, lk), batch_spec(C, 2)],
      out_shape=[jax.ShapeDtypeStruct((N, C, lk), matmul_dtype),
                 jax.ShapeDtypeStruct((N, C, 2), jnp.float32)],
      compiler_params=cparams,
  )(xf, w1f, mask)

  count = float(N * H * W)
  sc1 = _fold_bn(s1, g1, b1, count)

  # ---- pass 2: BN1 + ReLU + conv2 + partial BN2 stats ------------------------
  h2, s2 = pl.pallas_call(
      functools.partial(_bn1_conv2_kernel, p0=p0, lk=lk, lf=lf, offs=offs,
                        prec=prec),
      grid=(N,),
      in_specs=[batch_spec(C, lk), const_spec(C, 9 * C), const_spec(1, lk),
                const_spec(1, C, 2)],
      out_specs=[batch_spec(C, lk), batch_spec(C, 2)],
      out_shape=[jax.ShapeDtypeStruct((N, C, lk), matmul_dtype),
                 jax.ShapeDtypeStruct((N, C, 2), jnp.float32)],
      scratch_shapes=[pltpu.VMEM((C, lf), matmul_dtype)],
      compiler_params=cparams,
  )(h1, w2f, mask, sc1)

  sc2 = _fold_bn(s2, g2, b2, count)

  # ---- pass 3: BN2 + residual + ReLU -----------------------------------------
  out_flat = pl.pallas_call(
      _bn2_residual_kernel,
      grid=(N,),
      in_specs=[batch_spec(C, lk), batch_spec(C, lk), const_spec(1, C, 2)],
      out_specs=batch_spec(C, lk),
      out_shape=jax.ShapeDtypeStruct((N, C, lk), jnp.float32),
      compiler_params=cparams,
  )(h2, xr, sc2)

  # Lane-dense (N, C, H*wp) store in the kernel; strip the 2 wrap columns here.
  return out_flat.reshape(N, C, H, wp)[:, :, :, :W]


# ------------------------------ pure-JAX reference ------------------------------
def _reference(x, w1, w2, g1, b1, g2, b2):
  dn = ('NCHW', 'HWIO', 'NCHW')
  prec = lax.Precision.HIGHEST

  def bn(a, g, b):
    m = jnp.mean(a, axis=(0, 2, 3), keepdims=True)
    v = jnp.mean(a * a, axis=(0, 2, 3), keepdims=True) - m * m
    return ((a - m) * lax.rsqrt(v + EPS) * g.reshape(1, -1, 1, 1)
            + b.reshape(1, -1, 1, 1))

  h = lax.conv_general_dilated(x, w1, (1, 1), 'SAME', dimension_numbers=dn,
                               precision=prec)
  h = jnp.maximum(bn(h, g1, b1), 0.0)
  h = lax.conv_general_dilated(h, w2, (1, 1), 'SAME', dimension_numbers=dn,
                               precision=prec)
  return jnp.maximum(bn(h, g2, b2) + x, 0.0)


if __name__ == "__main__":
  N, C, H, W = 2, 8, 16, 16          # small shapes; in_features == C

  key = jax.random.PRNGKey(0)
  kx, k1, k2, kg1, kb1, kg2, kb2 = jax.random.split(key, 7)

  x = jax.random.normal(kx, (N, C, H, W), jnp.float32)
  # Conv weights stored HWIO (3, 3, C_in, C_out); deterministic init.
  w1 = jax.random.normal(k1, (3, 3, C, C), jnp.float32) * 0.1
  w2 = jax.random.normal(k2, (3, 3, C, C), jnp.float32) * 0.1
  g1 = 1.0 + 0.1 * jax.random.normal(kg1, (C,), jnp.float32)
  b1 = 0.1 * jax.random.normal(kb1, (C,), jnp.float32)
  g2 = 1.0 + 0.1 * jax.random.normal(kg2, (C,), jnp.float32)
  b2 = 0.1 * jax.random.normal(kb2, (C,), jnp.float32)

  ref = jax.block_until_ready(_reference(x, w1, w2, g1, b1, g2, b2))

  # f32 MXU path (HIGHEST precision requested): tight-ish correctness check.
  out_f32 = jax.block_until_ready(
      residual_block(x, w1, w2, g1, b1, g2, b2, matmul_dtype=jnp.float32))
  assert out_f32.shape == (N, C, H, W)
  err32 = float(jnp.max(jnp.abs(out_f32 - ref)))
  assert err32 < 1e-2, err32

  # bf16 MXU path (default; 2x MXU rate + halved matmul/activation footprint).
  out_bf16 = jax.block_until_ready(
      residual_block(x, w1, w2, g1, b1, g2, b2, matmul_dtype=jnp.bfloat16))
  assert out_bf16.shape == (N, C, H, W)
  err16 = float(jnp.max(jnp.abs(out_bf16 - ref)))
  assert err16 < 6e-2, err16

  print("KERNEL_OK")
</pallas_src>

<mosaic_0001>
module attributes {stable_mosaic.version = 11 : i64} {
  func.func @_conv1_kernel(%arg0: i32, %arg1: memref<1x8x435xf32, #tpu.memory_space<vmem>>, %arg2: memref<8x72xf32, #tpu.memory_space<vmem>>, %arg3: memref<1x288xf32, #tpu.memory_space<vmem>>, %arg4: memref<1x8x288xf32, #tpu.memory_space<vmem>>, %arg5: memref<1x8x2xf32, #tpu.memory_space<vmem>>) attributes {dimension_semantics = [#tpu.dimension_semantics<parallel>], iteration_bounds = array<i64: 2>, scalar_prefetch = 0 : i64, scratch_operands = 0 : i64, tpu.core_type = #tpu.core_type<tc>, window_params = [{transform_indices = @transform_0, window_bounds = array<i64: 1, 8, 435>}, {pipeline_mode = #tpu.pipeline_mode<synchronous>, transform_indices = @transform_1, window_bounds = array<i64: 8, 72>}, {pipeline_mode = #tpu.pipeline_mode<synchronous>, transform_indices = @transform_2, window_bounds = array<i64: 1, 288>}, {transform_indices = @transform_3, window_bounds = array<i64: 1, 8, 288>}, {transform_indices = @transform_4, window_bounds = array<i64: 1, 8, 2>}]} {
    %c0 = arith.constant 0 : index
    %c0_0 = arith.constant 0 : index
    %c109 = arith.constant 109 : index
    %0 = vector.load %arg1[%c0, %c0_0, %c109] : memref<1x8x435xf32, #tpu.memory_space<vmem>>, vector<1x8x288xf32>
    %1 = vector.shape_cast %0 : vector<1x8x288xf32> to vector<8x288xf32>
    %c0_1 = arith.constant 0 : index
    %c0_2 = arith.constant 0 : index
    %c110 = arith.constant 110 : index
    %2 = vector.load %arg1[%c0_1, %c0_2, %c110] : memref<1x8x435xf32, #tpu.memory_space<vmem>>, vector<1x8x288xf32>
    %3 = vector.shape_cast %2 : vector<1x8x288xf32> to vector<8x288xf32>
    %c0_3 = arith.constant 0 : index
    %c0_4 = arith.constant 0 : index
    %c111 = arith.constant 111 : index
    %4 = vector.load %arg1[%c0_3, %c0_4, %c111] : memref<1x8x435xf32, #tpu.memory_space<vmem>>, vector<1x8x288xf32>
    %5 = vector.shape_cast %4 : vector<1x8x288xf32> to vector<8x288xf32>
    %c0_5 = arith.constant 0 : index
    %c0_6 = arith.constant 0 : index
    %c127 = arith.constant 127 : index
    %6 = vector.load %arg1[%c0_5, %c0_6, %c127] : memref<1x8x435xf32, #tpu.memory_space<vmem>>, vector<1x8x288xf32>
    %7 = vector.shape_cast %6 : vector<1x8x288xf32> to vector<8x288xf32>
    %c0_7 = arith.constant 0 : index
    %c0_8 = arith.constant 0 : index
    %c128 = arith.constant 128 : index
    %8 = vector.load %arg1[%c0_7, %c0_8, %c128] : memref<1x8x435xf32, #tpu.memory_space<vmem>>, vector<1x8x288xf32>
    %9 = vector.shape_cast %8 : vector<1x8x288xf32> to vector<8x288xf32>
    %c0_9 = arith.constant 0 : index
    %c0_10 = arith.constant 0 : index
    %c129 = arith.constant 129 : index
    %10 = vector.load %arg1[%c0_9, %c0_10, %c129] : memref<1x8x435xf32, #tpu.memory_space<vmem>>, vector<1x8x288xf32>
    %11 = vector.shape_cast %10 : vector<1x8x288xf32> to vector<8x288xf32>
    %c0_11 = arith.constant 0 : index
    %c0_12 = arith.constant 0 : index
    %c145 = arith.constant 145 : index
    %12 = vector.load %arg1[%c0_11, %c0_12, %c145] : memref<1x8x435xf32, #tpu.memory_space<vmem>>, vector<1x8x288xf32>
    %13 = vector.shape_cast %12 : vector<1x8x288xf32> to vector<8x288xf32>
    %c0_13 = arith.constant 0 : index
    %c0_14 = arith.constant 0 : index
    %c146 = arith.constant 146 : index
    %14 = vector.load %arg1[%c0_13, %c0_14, %c146] : memref<1x8x435xf32, #tpu.memory_space<vmem>>, vector<1x8x288xf32>
    %15 = vector.shape_cast %14 : vector<1x8x288xf32> to vector<8x288xf32>
    %c0_15 = arith.constant 0 : index
    %c0_16 = arith.constant 0 : index
    %c147 = arith.constant 147 : index
    %16 = vector.load %arg1[%c0_15, %c0_16, %c147] : memref<1x8x435xf32, #tpu.memory_space<vmem>>, vector<1x8x288xf32>
    %17 = vector.shape_cast %16 : vector<1x8x288xf32> to vector<8x288xf32>
    %18 = tpu.concatenate %1, %3, %5, %7, %9, %11, %13, %15, %17 in 0 : vector<8x288xf32>, vector<8x288xf32>, vector<8x288xf32>, vector<8x288xf32>, vector<8x288xf32>, vector<8x288xf32>, vector<8x288xf32>, vector<8x288xf32>, vector<8x288xf32> -> vector<72x288xf32>
    %c0_17 = arith.constant 0 : index
    %c0_18 = arith.constant 0 : index
    %19 = vector.load %arg2[%c0_17, %c0_18] : memref<8x72xf32, #tpu.memory_space<vmem>>, vector<8x72xf32>
    %cst = arith.constant dense<0.000000e+00> : vector<8x288xf32>
    %20 = tpu.matmul %19, %18, %cst {dimension_numbers = #tpu.dot_dimension_numbers<[1], [0], [0], [1], [0, 0, 1, 1], [], []>, precision = #tpu.contract_precision<fp32>} : vector<8x72xf32>, vector<72x288xf32>, vector<8x288xf32> -> vector<8x288xf32>
    %c0_19 = arith.constant 0 : index
    %c0_20 = arith.constant 0 : index
    %21 = vector.load %arg3[%c0_19, %c0_20] : memref<1x288xf32, #tpu.memory_space<vmem>>, vector<1x288xf32>
    %22 = vector.broadcast %21 : vector<1x288xf32> to vector<8x288xf32>
    %23 = arith.mulf %20, %22 : vector<8x288xf32>
    %cst_21 = arith.constant dense<0.000000e+00> : vector<8xf32>
    %24 = vector.multi_reduction <add>, %23, %cst_21 [1] : vector<8x288xf32> to vector<8xf32>
    %25 = vector.shape_cast %24 : vector<8xf32> to vector<8x1xf32>
    %26 = arith.mulf %23, %20 : vector<8x288xf32>
    %cst_22 = arith.constant dense<0.000000e+00> : vector<8xf32>
    %27 = vector.multi_reduction <add>, %26, %cst_22 [1] : vector<8x288xf32> to vector<8xf32>
    %28 = vector.shape_cast %27 : vector<8xf32> to vector<8x1xf32>
    %29 = tpu.concatenate %25, %28 in 1 : vector<8x1xf32>, vector<8x1xf32> -> vector<8x2xf32>
    %c0_23 = arith.constant 0 : index
    %c0_24 = arith.constant 0 : index
    %c0_25 = arith.constant 0 : index
    %30 = vector.load %arg5[%c0_23, %c0_24, %c0_25] : memref<1x8x2xf32, #tpu.memory_space<vmem>>, vector<1x8x2xf32>
    %31 = vector.shape_cast %30 : vector<1x8x2xf32> to vector<8x2xf32>
    %32 = vector.shape_cast %29 : vector<8x2xf32> to vector<1x8x2xf32>
    tpu.vector_store %arg5[%c0_23, %c0_24, %c0_25], %32 {strides = array<i32>} : memref<1x8x2xf32, #tpu.memory_space<vmem>>, vector<1x8x2xf32>,
    %c0_26 = arith.constant 0 : index
    %c0_27 = arith.constant 0 : index
    %c0_28 = arith.constant 0 : index
    %33 = vector.load %arg4[%c0_26, %c0_27, %c0_28] : memref<1x8x288xf32, #tpu.memory_space<vmem>>, vector<1x8x288xf32>
    %34 = vector.shape_cast %33 : vector<1x8x288xf32> to vector<8x288xf32>
    %35 = vector.shape_cast %20 : vector<8x288xf32> to vector<1x8x288xf32>
    tpu.vector_store %arg4[%c0_26, %c0_27, %c0_28], %35 {strides = array<i32>} : memref<1x8x288xf32, #tpu.memory_space<vmem>>, vector<1x8x288xf32>,
    return
  }
  func.func @transform_0(%arg0: i32) -> (i32, i32, i32) {
    %c0_i32 = arith.constant 0 : i32
    %c0_i32_0 = arith.constant 0 : i32
    %c0_i32_1 = arith.constant 0 : i32
    return %arg0, %c0_i32, %c0_i32_0 : i32, i32, i32
  }
  func.func @transform_1(%arg0: i32) -> (i32, i32) {
    %c0_i32 = arith.constant 0 : i32
    %c0_i32_0 = arith.constant 0 : i32
    %c0_i32_1 = arith.constant 0 : i32
    return %c0_i32, %c0_i32_0 : i32, i32
  }
  func.func @transform_2(%arg0: i32) -> (i32, i32) {
    %c0_i32 = arith.constant 0 : i32
    %c0_i32_0 = arith.constant 0 : i32
    %c0_i32_1 = arith.constant 0 : i32
    return %c0_i32, %c0_i32_0 : i32, i32
  }
  func.func @transform_3(%arg0: i32) -> (i32, i32, i32) {
    %c0_i32 = arith.constant 0 : i32
    %c0_i32_0 = arith.constant 0 : i32
    %c0_i32_1 = arith.constant 0 : i32
    return %arg0, %c0_i32, %c0_i32_0 : i32, i32, i32
  }
  func.func @transform_4(%arg0: i32) -> (i32, i32, i32) {
    %c0_i32 = arith.constant 0 : i32
    %c0_i32_0 = arith.constant 0 : i32
    %c0_i32_1 = arith.constant 0 : i32
    return %arg0, %c0_i32, %c0_i32_0 : i32, i32, i32
  }
}

module attributes {stable_mosaic.version = 11 : i64} {
  func.func @_bn1_conv2_kernel(%arg0: i32, %arg1: memref<1x8x288xf32, #tpu.memory_space<vmem>>, %arg2: memref<8x72xf32, #tpu.memory_space<vmem>>, %arg3: memref<1x288xf32, #tpu.memory_space<vmem>>, %arg4: memref<1x8x2xf32, #tpu.memory_space<vmem>>, %arg5: memref<1x8x288xf32, #tpu.memory_space<vmem>>, %arg6: memref<1x8x2xf32, #tpu.memory_space<vmem>>, %arg7: memref<8x435xf32, #tpu.memory_space<vmem>>) attributes {dimension_semantics = [#tpu.dimension_semantics<parallel>], iteration_bounds = array<i64: 2>, scalar_prefetch = 0 : i64, scratch_operands = 1 : i64, tpu.core_type = #tpu.core_type<tc>, window_params = [{transform_indices = @transform_0, window_bounds = array<i64: 1, 8, 288>}, {pipeline_mode = #tpu.pipeline_mode<synchronous>, transform_indices = @transform_1, window_bounds = array<i64: 8, 72>}, {pipeline_mode = #tpu.pipeline_mode<synchronous>, transform_indices = @transform_2, window_bounds = array<i64: 1, 288>}, {pipeline_mode = #tpu.pipeline_mode<synchronous>, transform_indices = @transform_3, window_bounds = array<i64: 1, 8, 2>}, {transform_indices = @transform_4, window_bounds = array<i64: 1, 8, 288>}, {transform_indices = @transform_5, window_bounds = array<i64: 1, 8, 2>}]} {
    %c0 = arith.constant 0 : index
    %c0_0 = arith.constant 0 : index
    %c0_1 = arith.constant 0 : index
    %0 = vector.load %arg4[%c0, %c0_0, %c0_1] : memref<1x8x2xf32, #tpu.memory_space<vmem>>, vector<1x8x1xf32>
    %1 = vector.shape_cast %0 : vector<1x8x1xf32> to vector<8x1xf32>
    %c0_2 = arith.constant 0 : index
    %c0_3 = arith.constant 0 : index
    %c1 = arith.constant 1 : index
    %2 = vector.load %arg4[%c0_2, %c0_3, %c1] : memref<1x8x2xf32, #tpu.memory_space<vmem>>, vector<1x8x1xf32>
    %3 = vector.shape_cast %2 : vector<1x8x1xf32> to vector<8x1xf32>
    %c0_4 = arith.constant 0 : index
    %c0_5 = arith.constant 0 : index
    %4 = vector.load %arg3[%c0_4, %c0_5] : memref<1x288xf32, #tpu.memory_space<vmem>>, vector<1x288xf32>
    %c0_6 = arith.constant 0 : index
    %c0_7 = arith.constant 0 : index
    %c0_8 = arith.constant 0 : index
    %5 = vector.load %arg1[%c0_6, %c0_7, %c0_8] : memref<1x8x288xf32, #tpu.memory_space<vmem>>, vector<1x8x288xf32>
    %6 = vector.shape_cast %5 : vector<1x8x288xf32> to vector<8x288xf32>
    %7 = vector.broadcast %1 : vector<8x1xf32> to vector<8x288xf32>
    %8 = arith.mulf %6, %7 : vector<8x288xf32>
    %9 = vector.broadcast %3 : vector<8x1xf32> to vector<8x288xf32>
    %10 = arith.addf %8, %9 : vector<8x288xf32>
    %cst = arith.constant 0.000000e+00 : f32
    %11 = vector.broadcast %cst : f32 to vector<8x288xf32>
    %12 = arith.maximumf %10, %11 : vector<8x288xf32>
    %13 = vector.broadcast %4 : vector<1x288xf32> to vector<8x288xf32>
    %14 = arith.mulf %12, %13 : vector<8x288xf32>
    %cst_9 = arith.constant 0.000000e+00 : f32
    %15 = vector.broadcast %cst_9 : f32 to vector<8x128xf32>
    %c0_10 = arith.constant 0 : index
    %c0_11 = arith.constant 0 : index
    %16 = vector.load %arg7[%c0_10, %c0_11] : memref<8x435xf32, #tpu.memory_space<vmem>>, vector<8x128xf32>
    tpu.vector_store %arg7[%c0_10, %c0_11], %15 {strides = array<i32>} : memref<8x435xf32, #tpu.memory_space<vmem>>, vector<8x128xf32>,
    %cst_12 = arith.constant 0.000000e+00 : f32
    %17 = vector.broadcast %cst_12 : f32 to vector<8x19xf32>
    %c0_13 = arith.constant 0 : index
    %c416 = arith.constant 416 : index
    %18 = vector.load %arg7[%c0_13, %c416] : memref<8x435xf32, #tpu.memory_space<vmem>>, vector<8x19xf32>
    tpu.vector_store %arg7[%c0_13, %c416], %17 {strides = array<i32>} : memref<8x435xf32, #tpu.memory_space<vmem>>, vector<8x19xf32>,
    %c0_14 = arith.constant 0 : index
    %c128 = arith.constant 128 : index
    %19 = vector.load %arg7[%c0_14, %c128] : memref<8x435xf32, #tpu.memory_space<vmem>>, vector<8x288xf32>
    tpu.vector_store %arg7[%c0_14, %c128], %14 {strides = array<i32>} : memref<8x435xf32, #tpu.memory_space<vmem>>, vector<8x288xf32>,
    %c0_15 = arith.constant 0 : index
    %c109 = arith.constant 109 : index
    %20 = vector.load %arg7[%c0_15, %c109] : memref<8x435xf32, #tpu.memory_space<vmem>>, vector<8x288xf32>
    %c0_16 = arith.constant 0 : index
    %c110 = arith.constant 110 : index
    %21 = vector.load %arg7[%c0_16, %c110] : memref<8x435xf32, #tpu.memory_space<vmem>>, vector<8x288xf32>
    %c0_17 = arith.constant 0 : index
    %c111 = arith.constant 111 : index
    %22 = vector.load %arg7[%c0_17, %c111] : memref<8x435xf32, #tpu.memory_space<vmem>>, vector<8x288xf32>
    %c0_18 = arith.constant 0 : index
    %c127 = arith.constant 127 : index
    %23 = vector.load %arg7[%c0_18, %c127] : memref<8x435xf32, #tpu.memory_space<vmem>>, vector<8x288xf32>
    %c0_19 = arith.constant 0 : index
    %c128_20 = arith.constant 128 : index
    %24 = vector.load %arg7[%c0_19, %c128_20] : memref<8x435xf32, #tpu.memory_space<vmem>>, vector<8x288xf32>
    %c0_21 = arith.constant 0 : index
    %c129 = arith.constant 129 : index
    %25 = vector.load %arg7[%c0_21, %c129] : memref<8x435xf32, #tpu.memory_space<vmem>>, vector<8x288xf32>
    %c0_22 = arith.constant 0 : index
    %c145 = arith.constant 145 : index
    %26 = vector.load %arg7[%c0_22, %c145] : memref<8x435xf32, #tpu.memory_space<vmem>>, vector<8x288xf32>
    %c0_23 = arith.constant 0 : index
    %c146 = arith.constant 146 : index
    %27 = vector.load %arg7[%c0_23, %c146] : memref<8x435xf32, #tpu.memory_space<vmem>>, vector<8x288xf32>
    %c0_24 = arith.constant 0 : index
    %c147 = arith.constant 147 : index
    %28 = vector.load %arg7[%c0_24, %c147] : memref<8x435xf32, #tpu.memory_space<vmem>>, vector<8x288xf32>
    %29 = tpu.concatenate %20, %21, %22, %23, %24, %25, %26, %27, %28 in 0 : vector<8x288xf32>, vector<8x288xf32>, vector<8x288xf32>, vector<8x288xf32>, vector<8x288xf32>, vector<8x288xf32>, vector<8x288xf32>, vector<8x288xf32>, vector<8x288xf32> -> vector<72x288xf32>
    %c0_25 = arith.constant 0 : index
    %c0_26 = arith.constant 0 : index
    %30 = vector.load %arg2[%c0_25, %c0_26] : memref<8x72xf32, #tpu.memory_space<vmem>>, vector<8x72xf32>
    %cst_27 = arith.constant dense<0.000000e+00> : vector<8x288xf32>
    %31 = tpu.matmul %30, %29, %cst_27 {dimension_numbers = #tpu.dot_dimension_numbers<[1], [0], [0], [1], [0, 0, 1, 1], [], []>, precision = #tpu.contract_precision<fp32>} : vector<8x72xf32>, vector<72x288xf32>, vector<8x288xf32> -> vector<8x288xf32>
    %32 = vector.broadcast %4 : vector<1x288xf32> to vector<8x288xf32>
    %33 = arith.mulf %31, %32 : vector<8x288xf32>
    %cst_28 = arith.constant dense<0.000000e+00> : vector<8xf32>
    %34 = vector.multi_reduction <add>, %33, %cst_28 [1] : vector<8x288xf32> to vector<8xf32>
    %35 = vector.shape_cast %34 : vector<8xf32> to vector<8x1xf32>
    %36 = arith.mulf %33, %31 : vector<8x288xf32>
    %cst_29 = arith.constant dense<0.000000e+00> : vector<8xf32>
    %37 = vector.multi_reduction <add>, %36, %cst_29 [1] : vector<8x288xf32> to vector<8xf32>
    %38 = vector.shape_cast %37 : vector<8xf32> to vector<8x1xf32>
    %39 = tpu.concatenate %35, %38 in 1 : vector<8x1xf32>, vector<8x1xf32> -> vector<8x2xf32>
    %c0_30 = arith.constant 0 : index
    %c0_31 = arith.constant 0 : index
    %c0_32 = arith.constant 0 : index
    %40 = vector.load %arg6[%c0_30, %c0_31, %c0_32] : memref<1x8x2xf32, #tpu.memory_space<vmem>>, vector<1x8x2xf32>
    %41 = vector.shape_cast %40 : vector<1x8x2xf32> to vector<8x2xf32>
    %42 = vector.shape_cast %39 : vector<8x2xf32> to vector<1x8x2xf32>
    tpu.vector_store %arg6[%c0_30, %c0_31, %c0_32], %42 {strides = array<i32>} : memref<1x8x2xf32, #tpu.memory_space<vmem>>, vector<1x8x2xf32>,
    %c0_33 = arith.constant 0 : index
    %c0_34 = arith.constant 0 : index
    %c0_35 = arith.constant 0 : index
    %43 = vector.load %arg5[%c0_33, %c0_34, %c0_35] : memref<1x8x288xf32, #tpu.memory_space<vmem>>, vector<1x8x288xf32>
    %44 = vector.shape_cast %43 : vector<1x8x288xf32> to vector<8x288xf32>
    %45 = vector.shape_cast %31 : vector<8x288xf32> to vector<1x8x288xf32>
    tpu.vector_store %arg5[%c0_33, %c0_34, %c0_35], %45 {strides = array<i32>} : memref<1x8x288xf32, #tpu.memory_space<vmem>>, vector<1x8x288xf32>,
    return
  }
  func.func @transform_0(%arg0: i32) -> (i32, i32, i32) {
    %c0_i32 = arith.constant 0 : i32
    %c0_i32_0 = arith.constant 0 : i32
    %c0_i32_1 = arith.constant 0 : i32
    return %arg0, %c0_i32, %c0_i32_0 : i32, i32, i32
  }
  func.func @transform_1(%arg0: i32) -> (i32, i32) {
    %c0_i32 = arith.constant 0 : i32
    %c0_i32_0 = arith.constant 0 : i32
    %c0_i32_1 = arith.constant 0 : i32
    return %c0_i32, %c0_i32_0 : i32, i32
  }
  func.func @transform_2(%arg0: i32) -> (i32, i32) {
    %c0_i32 = arith.constant 0 : i32
    %c0_i32_0 = arith.constant 0 : i32
    %c0_i32_1 = arith.constant 0 : i32
    return %c0_i32, %c0_i32_0 : i32, i32
  }
  func.func @transform_3(%arg0: i32) -> (i32, i32, i32) {
    %c0_i32 = arith.constant 0 : i32
    %c0_i32_0 = arith.constant 0 : i32
    %c0_i32_1 = arith.constant 0 : i32
    %c0_i32_2 = arith.constant 0 : i32
    return %c0_i32, %c0_i32_0, %c0_i32_1 : i32, i32, i32
  }
  func.func @transform_4(%arg0: i32) -> (i32, i32, i32) {
    %c0_i32 = arith.constant 0 : i32
    %c0_i32_0 = arith.constant 0 : i32
    %c0_i32_1 = arith.constant 0 : i32
    return %arg0, %c0_i32, %c0_i32_0 : i32, i32, i32
  }
  func.func @transform_5(%arg0: i32) -> (i32, i32, i32) {
    %c0_i32 = arith.constant 0 : i32
    %c0_i32_0 = arith.constant 0 : i32
    %c0_i32_1 = arith.constant 0 : i32
    return %arg0, %c0_i32, %c0_i32_0 : i32, i32, i32
  }
}

module attributes {stable_mosaic.version = 11 : i64} {
  func.func @_bn2_residual_kernel(%arg0: i32, %arg1: memref<1x8x288xf32, #tpu.memory_space<vmem>>, %arg2: memref<1x8x288xf32, #tpu.memory_space<vmem>>, %arg3: memref<1x8x2xf32, #tpu.memory_space<vmem>>, %arg4: memref<1x8x288xf32, #tpu.memory_space<vmem>>) attributes {dimension_semantics = [#tpu.dimension_semantics<parallel>], iteration_bounds = array<i64: 2>, scalar_prefetch = 0 : i64, scratch_operands = 0 : i64, tpu.core_type = #tpu.core_type<tc>, window_params = [{transform_indices = @transform_0, window_bounds = array<i64: 1, 8, 288>}, {transform_indices = @transform_1, window_bounds = array<i64: 1, 8, 288>}, {pipeline_mode = #tpu.pipeline_mode<synchronous>, transform_indices = @transform_2, window_bounds = array<i64: 1, 8, 2>}, {transform_indices = @transform_3, window_bounds = array<i64: 1, 8, 288>}]} {
    %c0 = arith.constant 0 : index
    %c0_0 = arith.constant 0 : index
    %c0_1 = arith.constant 0 : index
    %0 = vector.load %arg3[%c0, %c0_0, %c0_1] : memref<1x8x2xf32, #tpu.memory_space<vmem>>, vector<1x8x1xf32>
    %1 = vector.shape_cast %0 : vector<1x8x1xf32> to vector<8x1xf32>
    %c0_2 = arith.constant 0 : index
    %c0_3 = arith.constant 0 : index
    %c1 = arith.constant 1 : index
    %2 = vector.load %arg3[%c0_2, %c0_3, %c1] : memref<1x8x2xf32, #tpu.memory_space<vmem>>, vector<1x8x1xf32>
    %3 = vector.shape_cast %2 : vector<1x8x1xf32> to vector<8x1xf32>
    %c0_4 = arith.constant 0 : index
    %c0_5 = arith.constant 0 : index
    %c0_6 = arith.constant 0 : index
    %4 = vector.load %arg1[%c0_4, %c0_5, %c0_6] : memref<1x8x288xf32, #tpu.memory_space<vmem>>, vector<1x8x288xf32>
    %5 = vector.shape_cast %4 : vector<1x8x288xf32> to vector<8x288xf32>
    %6 = vector.broadcast %1 : vector<8x1xf32> to vector<8x288xf32>
    %7 = arith.mulf %5, %6 : vector<8x288xf32>
    %8 = vector.broadcast %3 : vector<8x1xf32> to vector<8x288xf32>
    %9 = arith.addf %7, %8 : vector<8x288xf32>
    %c0_7 = arith.constant 0 : index
    %c0_8 = arith.constant 0 : index
    %c0_9 = arith.constant 0 : index
    %10 = vector.load %arg2[%c0_7, %c0_8, %c0_9] : memref<1x8x288xf32, #tpu.memory_space<vmem>>, vector<1x8x288xf32>
    %11 = vector.shape_cast %10 : vector<1x8x288xf32> to vector<8x288xf32>
    %12 = arith.addf %9, %11 : vector<8x288xf32>
    %cst = arith.constant 0.000000e+00 : f32
    %13 = vector.broadcast %cst : f32 to vector<8x288xf32>
    %14 = arith.maximumf %12, %13 : vector<8x288xf32>
    %c0_10 = arith.constant 0 : index
    %c0_11 = arith.constant 0 : index
    %c0_12 = arith.constant 0 : index
    %15 = vector.load %arg4[%c0_10, %c0_11, %c0_12] : memref<1x8x288xf32, #tpu.memory_space<vmem>>, vector<1x8x288xf32>
    %16 = vector.shape_cast %15 : vector<1x8x288xf32> to vector<8x288xf32>
    %17 = vector.shape_cast %14 : vector<8x288xf32> to vector<1x8x288xf32>
    tpu.vector_store %arg4[%c0_10, %c0_11, %c0_12], %17 {strides = array<i32>} : memref<1x8x288xf32, #tpu.memory_space<vmem>>, vector<1x8x288xf32>,
    return
  }
  func.func @transform_0(%arg0: i32) -> (i32, i32, i32) {
    %c0_i32 = arith.constant 0 : i32
    %c0_i32_0 = arith.constant 0 : i32
    %c0_i32_1 = arith.constant 0 : i32
    return %arg0, %c0_i32, %c0_i32_0 : i32, i32, i32
  }
  func.func @transform_1(%arg0: i32) -> (i32, i32, i32) {
    %c0_i32 = arith.constant 0 : i32
    %c0_i32_0 = arith.constant 0 : i32
    %c0_i32_1 = arith.constant 0 : i32
    return %arg0, %c0_i32, %c0_i32_0 : i32, i32, i32
  }
  func.func @transform_2(%arg0: i32) -> (i32, i32, i32) {
    %c0_i32 = arith.constant 0 : i32
    %c0_i32_0 = arith.constant 0 : i32
    %c0_i32_1 = arith.constant 0 : i32
    %c0_i32_2 = arith.constant 0 : i32
    return %c0_i32, %c0_i32_0, %c0_i32_1 : i32, i32, i32
  }
  func.func @transform_3(%arg0: i32) -> (i32, i32, i32) {
    %c0_i32 = arith.constant 0 : i32
    %c0_i32_0 = arith.constant 0 : i32
    %c0_i32_1 = arith.constant 0 : i32
    return %arg0, %c0_i32, %c0_i32_0 : i32, i32, i32
  }
}

</mosaic_0001>

<bundles_post_ra>
// kernel: residual_block.5
= control target key start
LH: loop header
LB: loop body
LE: loop exit
PB: predicated region body
PF: predicated region fallthrough
CT: control target
= control target key end

     0   :  { %s343_s12 = smov 0   ;;  %s366_s0 = inlined_call_operand.vmem [shape: f32[2,8,288], index: 0, kind: input, shape index: {}]   ;;  %s367_s1 = inlined_call_operand.vmem [shape: f32[2,8,288], index: 1, kind: input, shape index: {}]   ;;  %s368_s2 = inlined_call_operand.vmem [shape: f32[1,8,2], index: 2, kind: input, shape index: {}]   ;;  %s369_s3 = inlined_call_operand.vmem [shape: f32[2,8,288], index: 3, kind: output, shape index: {}]  }
   0x1 LB: > { %s290_s13 = sadd.s32 4294967295, %s319_s12   ;;  %p294_p0 = scmp.ge.s32.totalorder %s319_s12, 1  ;;  %s319_s12 = sphi %s343_s12, %s13_s12  }
   0x2   : > { %p147_p1 = scmp.lt.s32.totalorder %s319_s12, 3 }
   0x4   : > { %p148_p2 = pnand %p294_p0, %p147_p1 }
   0x5   : > { %p176_p3 = scmp.lt.s32.totalorder (!%p148_p2), %s290_s13, 1 }
   0x6   : > { %151 = sbr.rel (%p148_p2) target bundleno = 150 (0x96), region = 32 }
   0xb   : > { %v191_v0 = vld [vmem:[%s368_s2] sm:$0xff]  ;;  %v321_v1 = vmov 0   ;;  %v322_v2 = vmov 1   ;;  %s371_s13 = smov (!%p176_p3, %s290_s13), 1  ;;  %vm221_vm0 = vcmask 261120  }
   0xc   : > { %311 = vset.pattern.permute.xlu0 %v321_v1  ;;  %s300_s16 = smul.u32 24, %s371_s13 }
   0xd   : > { %197 = vperm.xlu0 %311, %v191_v0  }
   0xe   : > { %s180_s19 = scalar_lea.vmem %s366_s0, %s300_s16  ;;  %s185_s22 = scalar_lea.vmem %s367_s1, %s300_s16 }
   0xf   : > { %v192_v4 = vld [vmem:[%s180_s19] sm:$0xff]  ;;  %v193_v5 = vld [vmem:[%s180_s19 + $0x8] sm:$0xff]  ;;  %v194_v6 = vld [vmem:[%s180_s19 + $0x10] sm:$0xff]  ;;  %s190_s25 = scalar_lea.vmem %s369_s3, %s300_s16 }
  0x10   : > { %v210_v11 = vld [vmem:[%s185_s22] sm:$0xff]  ;;  %v211_v12 = vld [vmem:[%s185_s22 + $0x8] sm:$0xff]  ;;  %v212_v13 = vld [vmem:[%s185_s22 + $0x10] sm:$0xff] }
  0x11   : > { %312 = vset.pattern.permute.xlu0 %v322_v2 }
  0x12   : > { %204 = vperm.xlu0 %312, %v191_v0  }
  0x88   : > { %v198_v3 = vpop.permute.xlu0 %197 }
  0x89   : > { %v200_v7 = vmul.f32 %v198_v3, %v192_v4  ;;  %v201_v8 = vmul.f32 %v198_v3, %v193_v5  ;;  %v202_v9 = vmul.f32 %v198_v3, %v194_v6 }
  0x8d   : > { %v205_v10 = vpop.permute.xlu0 %204 }
  0x8e   : > { %v207_v14 = vadd.f32 %v205_v10, %v200_v7  ;;  %v208_v15 = vadd.f32 %v205_v10, %v201_v8  ;;  %v209_v16 = vadd.f32 %v205_v10, %v202_v9 }
  0x90   : > { %v213_v17 = vadd.f32 %v210_v11, %v207_v14  ;;  %v214_v18 = vadd.f32 %v211_v12, %v208_v15  ;;  %v215_v19 = vadd.f32 %v212_v13, %v209_v16 }
  0x92   : > { %v216_v20 = vmax.f32 %v213_v17, 0.0  ;;  %v217_v21 = vmax.f32 %v214_v18, 0.0  ;;  %v218_v22 = vmax.f32 %v215_v19, 0.0 }
  0x94   : > { %219 = vst [vmem:[%s190_s25] sm:$0xff] %v216_v20  ;;  %220 = vst [vmem:[%s190_s25 + $0x8] sm:$0xff] %v217_v21 }
  0x95   : > { %222 = vst.msk [vmem:[%s190_s25 + $0x10] sm:$0xff] %vm221_vm0, %v218_v22 }
  0x96 PF: > { %s13_s12 = sadd.s32 1, %s319_s12  }
  0x97   : > { %p10_p4 = scmp.ge.s32.totalorder %s13_s12, 4  }
  0x99   :  { %12 = sbr.rel (!%p10_p4) target bundleno = 1 (0x1), region = 65 }

// kernel: residual_block.3
= control target key start
LH: loop header
LB: loop body
LE: loop exit
PB: predicated region body
PF: predicated region fallthrough
CT: control target
= control target key end

     0   :  { %s2042_s15 = smov 0   ;;  %s2770_s0 = inlined_call_operand.vmem [shape: f32[2,8,435], index: 0, kind: input, shape index: {}]   ;;  %s2771_s1 = inlined_call_operand.vmem [shape: f32[8,72], index: 1, kind: input, shape index: {}]   ;;  %s2772_s2 = inlined_call_operand.vmem [shape: f32[1,288], index: 2, kind: input, shape index: {}]   ;;  %s2773_s3 = inlined_call_operand.vmem [shape: f32[2,8,288], index: 3, kind: output, shape index: {0}]   ;;  %s2774_s4 = inlined_call_operand.vmem [shape: f32[2,8,2], index: 4, kind: output, shape index: {1}]  }
   0x1 LB: > { %s1780_s16 = sadd.s32 4294967295, %s2004_s15   ;;  %p1784_p0 = scmp.ge.s32.totalorder %s2004_s15, 1  ;;  %s2004_s15 = sphi %s2042_s15, %s15_s15  }
   0x2   : > { %p165_p1 = scmp.lt.s32.totalorder %s2004_s15, 3 }
   0x4   : > { %p166_p2 = pnand %p1784_p0, %p165_p1 }
   0x5   : > { %p195_p3 = scmp.lt.s32.totalorder (!%p166_p2), %s1780_s16, 1  ;;  %s2006_s21 = smov (!%p166_p2), 90  }
   0x6   : > { %169 = sbr.rel (%p166_p2) target bundleno = 762 (0x2fa), region = 32  ;;  %s2007_s22 = smov (!%p166_p2), 91  }
   0x7   : > { %s2008_s23 = smov (!%p166_p2), 92   ;;  %s2009_s24 = smov (!%p166_p2), 108  }
   0x8   : > { %s2010_s25 = smov (!%p166_p2), 109   ;;  %s2011_s26 = smov (!%p166_p2), 110  }
   0x9   : > { %s2012_s27 = smov (!%p166_p2), 126   ;;  %s2013_s28 = smov (!%p166_p2), 127  }
   0xa   : > { %s2014_s29 = smov (!%p166_p2), 19  }
   0xb   : > { %s2802_s16 = smov (!%p195_p3, %s1780_s16), 1  ;;  %vm295_vm0 = vcmask 736256   ;;  %vm286_vm1 = vcmask 744448   ;;  %vm277_vm2 = vcmask 752640   ;;  %vm268_vm3 = vcmask 883712  }
   0xc   : > { %s1791_s17 = sshll.u32 %s2802_s16, 5  ;;  %vm259_vm4 = vcmask 891904   ;;  %vm249_vm5 = vcmask 900096   ;;  %vm237_vm6 = vcmask 1031168   ;;  %vm225_vm7 = vcmask 1039360   ;;  %s1978_s6 = smul.u32 24, %s2802_s16 }
   0xd   : > { %s199_s20 = scalar_lea.vmem %s2770_s0, %s1791_s17  ;;  %v2015_v49 = vmov 0.0   ;;  %vm371_vm8 = vcmask 154624   ;;  %vm426_vm9 = vcmask 588800   ;;  %vm2016_vm10 = vmmov 0   ;;  %s1788_s12 = sshll.u32 %s2802_s16, 3 }
   0xe   : > { %v2056_v0 = vld [vmem:[%s199_s20 + $0x18] sm:$0xff]  ;;  %v210_v1 = vld [vmem:[%s199_s20 + $0x8] sm:$0xff]  ;;  %v2059_v2 = vld [vmem:[%s199_s20 + $0x10] sm:$0xff]  ;;  %512 = vmatprep.mubr.f32.mxu0 %v2015_v49  ;;  %678 = vmatprep.mubr.f32.mxu1 %v2015_v49  ;;  %s2755_s9 = scalar_lea.vmem %s2773_s3, %s1978_s6  ;;  %vm1674_vm11 = vcmask 261120   ;;  %vm1687_vm12 = vcmask 7168   ;;  %s208_s17 = scalar_lea.vmem %s2774_s4, %s1788_s12  ;;  %vm1689_vm13 = vcmask 15360  }
   0xf   : > { %293 = vrot.lane.b32.xlu1 %v2056_v0, %s2006_s21  ;;  %289 = vrot.lane.b32.xlu0 %v210_v1, %s2006_s21  ;;  %v2072_v3 = vld [vmem:[%s199_s20] sm:$0xff] }
  0x13   : > { %280 = vrot.lane.b32.xlu1 %v210_v1, %s2007_s22  ;;  %291 = vrot.lane.b32.xlu0 %v2059_v2, %s2006_s21 }
  0x17   : > { %284 = vrot.lane.b32.xlu1 %v2056_v0, %s2007_s22  ;;  %282 = vrot.lane.b32.xlu0 %v2059_v2, %s2007_s22 }
  0x1b   : > { %273 = vrot.lane.b32.xlu1 %v2059_v2, %s2008_s23  ;;  %271 = vrot.lane.b32.xlu0 %v210_v1, %s2008_s23 }
  0x1f   : > { %262 = vrot.lane.b32.xlu1 %v210_v1, %s2009_s24  ;;  %275 = vrot.lane.b32.xlu0 %v2056_v0, %s2008_s23 }
  0x23   : > { %266 = vrot.lane.b32.xlu1 %v2056_v0, %s2009_s24  ;;  %264 = vrot.lane.b32.xlu0 %v2059_v2, %s2009_s24 }
  0x27   : > { %255 = vrot.lane.b32.xlu1 %v2059_v2, %s2010_s25  ;;  %253 = vrot.lane.b32.xlu0 %v210_v1, %s2010_s25 }
  0x2b   : > { %257 = vrot.lane.b32.xlu0 %v2056_v0, %s2010_s25  ;;  %243 = vrot.lane.b32.xlu1 %v210_v1, %s2011_s26 }
  0x2f   : > { %245 = vrot.lane.b32.xlu0 %v2059_v2, %s2011_s26  ;;  %247 = vrot.lane.b32.xlu1 %v2056_v0, %s2011_s26 }
  0x33   : > { %241 = vrot.lane.b32.xlu0 %v2072_v3, %s2011_s26  ;;  %231 = vrot.lane.b32.xlu1 %v210_v1, %s2012_s27 }
  0x37   : > { %233 = vrot.lane.b32.xlu0 %v2059_v2, %s2012_s27  ;;  %235 = vrot.lane.b32.xlu1 %v2056_v0, %s2012_s27 }
  0x3b   : > { %229 = vrot.lane.b32.xlu0 %v2072_v3, %s2012_s27  ;;  %219 = vrot.lane.b32.xlu1 %v210_v1, %s2013_s28 }
  0x3f   : > { %221 = vrot.lane.b32.xlu0 %v2059_v2, %s2013_s28  ;;  %223 = vrot.lane.b32.xlu1 %v2056_v0, %s2013_s28 }
  0x43   : > { %217 = vrot.lane.b32.xlu0 %v2072_v3, %s2013_s28  ;;  %301 = vrot.lane.b32.xlu1 %v210_v1, %s2014_s29 }
  0x81   : > { %v2082_v4 = vpop.permute.xlu1 %293  ;;  %v290_v5 = vpop.permute.xlu0 %289 }
  0x82   : > { %363 = vrot.lane.b32.xlu1 %v290_v5, %s2014_s29 }
  0x85   : > { %v281_v6 = vpop.permute.xlu1 %280  ;;  %v292_v7 = vpop.permute.xlu0 %291 }
  0x86   : > { %355 = vrot.lane.b32.xlu0 %v281_v6, %s2014_s29  ;;  %v297_v16 = vsel %vm295_vm0, %v292_v7, %v2082_v4  ;;  %v296_v20 = vsel %vm295_vm0, %v290_v5, %v292_v7 }
  0x89   : > { %v2086_v8 = vpop.permute.xlu1 %284  ;;  %v283_v9 = vpop.permute.xlu0 %282 }
  0x8a   : > { %v287_v19 = vsel %vm286_vm1, %v281_v6, %v283_v9  ;;  %v288_v24 = vsel %vm286_vm1, %v283_v9, %v2086_v8 }
  0x8d   : > { %v274_v10 = vpop.permute.xlu1 %273  ;;  %v272_v11 = vpop.permute.xlu0 %271 }
  0x8e   : > { %347 = vrot.lane.b32.xlu1 %v272_v11, %s2014_s29  ;;  %v278_v29 = vsel %vm277_vm2, %v272_v11, %v274_v10 }
  0x91   : > { %v263_v12 = vpop.permute.xlu1 %262  ;;  %v2089_v13 = vpop.permute.xlu0 %275 }
  0x92   : > { %339 = vrot.lane.b32.xlu0 %v263_v12, %s2014_s29  ;;  %v279_v21 = vsel %vm277_vm2, %v274_v10, %v2089_v13 }
  0x95   : > { %v2092_v14 = vpop.permute.xlu1 %266  ;;  %v265_v15 = vpop.permute.xlu0 %264 }
  0x96   : > { %367 = vrot.lane.b32.xlu0 %v297_v16, %s2014_s29  ;;  %v269_v25 = vsel %vm268_vm3, %v263_v12, %v265_v15  ;;  %v270_v33 = vsel %vm268_vm3, %v265_v15, %v2092_v14 }
  0x99   : > { %v256_v17 = vpop.permute.xlu1 %255  ;;  %v254_v18 = vpop.permute.xlu0 %253 }
  0x9a   : > { %331 = vrot.lane.b32.xlu1 %v254_v18, %s2014_s29  ;;  %357 = vrot.lane.b32.xlu0 %v287_v19, %s2014_s29  ;;  %v260_v36 = vsel %vm259_vm4, %v254_v18, %v256_v17 }
  0x9d   : > { %v258_v22 = vpop.permute.xlu0 %257  ;;  %v244_v23 = vpop.permute.xlu1 %243 }
  0x9e   : > { %365 = vrot.lane.b32.xlu1 %v296_v20, %s2014_s29  ;;  %351 = vrot.lane.b32.xlu0 %v279_v21, %s2014_s29  ;;  %v261_v28 = vsel %vm259_vm4, %v256_v17, %v258_v22 }
  0xa1   : > { %v246_v26 = vpop.permute.xlu0 %245  ;;  %v248_v27 = vpop.permute.xlu1 %247 }
  0xa2   : > { %359 = vrot.lane.b32.xlu1 %v288_v24, %s2014_s29  ;;  %341 = vrot.lane.b32.xlu0 %v269_v25, %s2014_s29  ;;  %v251_v32 = vsel %vm249_vm5, %v244_v23, %v246_v26  ;;  %v252_v41 = vsel %vm249_vm5, %v246_v26, %v248_v27 }
  0xa5   : > { %v242_v30 = vpop.permute.xlu0 %241  ;;  %v232_v31 = vpop.permute.xlu1 %231 }
  0xa6   : > { %349 = vrot.lane.b32.xlu1 %v278_v29, %s2014_s29  ;;  %335 = vrot.lane.b32.xlu0 %v261_v28, %s2014_s29  ;;  %v250_v37 = vsel %vm249_vm5, %v242_v30, %v244_v23 }
  0xa9   : > { %v234_v34 = vpop.permute.xlu0 %233  ;;  %v236_v35 = vpop.permute.xlu1 %235 }
  0xaa   : > { %343 = vrot.lane.b32.xlu1 %v270_v33, %s2014_s29  ;;  %325 = vrot.lane.b32.xlu0 %v251_v32, %s2014_s29  ;;  %v240_v39 = vsel %vm237_vm6, %v234_v34, %v236_v35  ;;  %v239_v44 = vsel %vm237_vm6, %v232_v31, %v234_v34 }
  0xad   : > { %v230_v38 = vpop.permute.xlu0 %229  ;;  %v220_v40 = vpop.permute.xlu1 %219 }
  0xae   : > { %333 = vrot.lane.b32.xlu1 %v260_v36, %s2014_s29  ;;  %323 = vrot.lane.b32.xlu0 %v250_v37, %s2014_s29  ;;  %v238_v47 = vsel %vm237_vm6, %v230_v38, %v232_v31  ;;  %v298_v38 = vld [vmem:[%s2771_s1] sm:$0xff] }
  0xb1   : > { %v222_v42 = vpop.permute.xlu0 %221  ;;  %v224_v48 = vpop.permute.xlu1 %223 }
  0xb2   : > { %327 = vrot.lane.b32.xlu1 %v252_v41, %s2014_s29  ;;  %319 = vrot.lane.b32.xlu0 %v240_v39, %s2014_s29  ;;  %v227_v43 = vsel %vm225_vm7, %v220_v40, %v222_v42  ;;  %v228_v50 = vsel %vm225_vm7, %v222_v42, %v224_v48 }
  0xb5   : > { %v218_v45 = vpop.permute.xlu0 %217  ;;  %v2151_v51 = vpop.permute.xlu1 %301 }
  0xb6   : > { %317 = vrot.lane.b32.xlu1 %v239_v44, %s2014_s29  ;;  %309 = vrot.lane.b32.xlu0 %v227_v43, %s2014_s29  ;;  %v226_v46 = vsel %vm225_vm7, %v218_v45, %v220_v40 }
  0xba   : > { %315 = vrot.lane.b32.xlu1 %v238_v47, %s2014_s29  ;;  %307 = vrot.lane.b32.xlu0 %v226_v46, %s2014_s29 }
  0xbe   : > { %311 = vrot.lane.b32.xlu1 %v228_v50, %s2014_s29  ;;  %303 = vrot.lane.b32.xlu0 %v2059_v2, %s2014_s29 }
  0xc2   : > { %299 = vrot.lane.b32.xlu1 %v2072_v3, %s2014_s29  ;;  %369 = vrot.lane.b32.xlu0 %v2082_v4, %s2014_s29 }
  0xc6   : > { %361 = vrot.lane.b32.xlu1 %v2086_v8, %s2014_s29  ;;  %353 = vrot.lane.b32.xlu0 %v2089_v13, %s2014_s29 }
  0xca   : > { %345 = vrot.lane.b32.xlu1 %v2092_v14, %s2014_s29  ;;  %337 = vrot.lane.b32.xlu0 %v258_v22, %s2014_s29 }
  0xce   : > { %329 = vrot.lane.b32.xlu1 %v248_v27, %s2014_s29  ;;  %321 = vrot.lane.b32.xlu0 %v236_v35, %s2014_s29 }
  0xd2   : > { %313 = vrot.lane.b32.xlu1 %v224_v48, %s2014_s29  ;;  %305 = vrot.lane.b32.xlu0 %v2056_v0, %s2014_s29 }
  0xf4   : > { %v364_v53 = vpop.permute.xlu1 %363 }
  0xf8   : > { %v356_v52 = vpop.permute.xlu0 %355 }
 0x100   : > { %v348_v55 = vpop.permute.xlu1 %347 }
 0x104   : > { %v340_v54 = vpop.permute.xlu0 %339 }
 0x108   : > { %v2153_v56 = vpop.permute.xlu0 %367 }
 0x10c   : > { %v2155_v57 = vpop.permute.xlu1 %331  ;;  %v358_v58 = vpop.permute.xlu0 %357 }
 0x10d   : > { %v393_v59 = vsel %vm371_vm8, %v356_v52, %v358_v58  ;;  %v428_v52 = vsel %vm426_vm9, %v298_v38, 0 }
 0x10e   : > { %v2158_v60 = vand.u32 4294901760, %v393_v59 }
 0x110   : > { %v366_v61 = vpop.permute.xlu1 %365  ;;  %v2160_v62 = vpop.permute.xlu0 %351  ;;  %v2170_v3 = vsub.f32 %v393_v59, %v2158_v60 }
 0x111   : > { %v396_v63 = vsel %vm371_vm8, %v364_v53, %v366_v61  ;;  %v397_v0 = vsel %vm371_vm8, %v366_v61, %v2153_v56 }
 0x112   : > { %v2165_v1 = vand.u32 4294901760, %v397_v0  ;;  %v2167_v2 = vand.u32 4294901760, %v396_v63  ;;  %v2787_v19 = vand.u32 4294901760, %v2170_v3 }
 0x114   : > { %v2173_v4 = vsub.f32 %v397_v0, %v2165_v1  ;;  %v2176_v5 = vsub.f32 %v396_v63, %v2167_v2  ;;  %v2178_v6 = vpop.permute.xlu1 %359  ;;  %445 = vmatprep.subr.mxu0 %v2165_v1  ;;  %v342_v7 = vpop.permute.xlu0 %341  ;;  %v559_v32 = vsub.f32 %v2170_v3, %v2787_v19 }
 0x115   : > { %v394_v8 = vsel %vm371_vm8, %v358_v58, %v2178_v6  ;;  %v387_v9 = vsel %vm371_vm8, %v340_v54, %v342_v7  ;;  %447 = vmatpush1.msra.mxu0 %v2167_v2 }
 0x116   : > { %v2185_v10 = vand.u32 4294901760, %v394_v8  ;;  %v540_v11 = vand.u32 4294901760, %v2173_v4  ;;  %v546_v12 = vand.u32 4294901760, %v2176_v5  ;;  %v2189_v13 = vand.u32 4294901760, %v387_v9 }
 0x117   : > { %v560_v44 = vand.u32 4294901760, %v559_v32 }
 0x118   : > { %v2192_v14 = vsub.f32 %v394_v8, %v2185_v10  ;;  %v350_v15 = vpop.permute.xlu1 %349  ;;  %449 = vmatprep.subr.mxu0 %v2185_v10  ;;  %v2195_v16 = vpop.permute.xlu0 %335  ;;  %v541_v17 = vsub.f32 %v2173_v4, %v540_v11  ;;  %v547_v18 = vsub.f32 %v2176_v5, %v546_v12  ;;  %v2213_v26 = vsub.f32 %v387_v9, %v2189_v13 }
 0x119   : > { %v390_v20 = vsel %vm371_vm8, %v348_v55, %v350_v15  ;;  %v391_v21 = vsel %vm371_vm8, %v350_v15, %v2160_v62  ;;  %451 = vmatpush1.msra.mxu0 %v2158_v60 }
 0x11a   : > { %v2208_v22 = vand.u32 4294901760, %v391_v21  ;;  %v2210_v23 = vand.u32 4294901760, %v390_v20  ;;  %v542_v24 = vand.u32 4294901760, %v541_v17  ;;  %v548_v25 = vand.u32 4294901760, %v547_v18 }
 0x11b   : > { %v552_v27 = vand.u32 4294901760, %v2192_v14  ;;  %v2780_v40 = vand.u32 4294901760, %v2213_v26  ;;  %v2288_v18 = vand.u32 4294901760, %v428_v52 }
 0x11c   : > { %v2217_v28 = vsub.f32 %v391_v21, %v2208_v22  ;;  %v2220_v29 = vsub.f32 %v390_v20, %v2210_v23  ;;  %v2222_v30 = vpop.permute.xlu1 %343  ;;  %453 = vmatprep.subr.mxu0 %v2208_v22  ;;  %543 = vmatprep.subr.mxu1 %v542_v24  ;;  %v326_v31 = vpop.permute.xlu0 %325 }
 0x11d   : > { %v388_v33 = vsel %vm371_vm8, %v342_v7, %v2222_v30  ;;  %455 = vmatpush1.msra.mxu0 %v2210_v23  ;;  %549 = vmatpush1.msra.mxu1 %v548_v25  ;;  %v553_v34 = vsub.f32 %v2192_v14, %v552_v27  ;;  %v583_v61 = vsub.f32 %v2213_v26, %v2780_v40 }
 0x11e   : > { %v2234_v35 = vand.u32 4294901760, %v388_v33  ;;  %v2783_v36 = vand.u32 4294901760, %v2217_v28  ;;  %v2782_v37 = vand.u32 4294901760, %v2220_v29 }
 0x11f   : > { %v554_v39 = vand.u32 4294901760, %v553_v34  ;;  %v584_v38 = vand.u32 4294901760, %v583_v61 }
 0x120   : > { %v2243_v41 = vsub.f32 %v388_v33, %v2234_v35  ;;  %v334_v42 = vpop.permute.xlu1 %333  ;;  %457 = vmatprep.subr.mxu0 %v2234_v35  ;;  %v324_v43 = vpop.permute.xlu0 %323  ;;  %v565_v45 = vsub.f32 %v2217_v28, %v2783_v36  ;;  %v571_v46 = vsub.f32 %v2220_v29, %v2782_v37 }
 0x121   : > { %v384_v47 = vsel %vm371_vm8, %v2155_v57, %v334_v42  ;;  %v385_v48 = vsel %vm371_vm8, %v334_v42, %v2195_v16  ;;  %555 = vmatprep.subr.mxu1 %v554_v39  ;;  %v381_v50 = vsel %vm371_vm8, %v324_v43, %v326_v31  ;;  %459 = vmatpush1.msra.mxu0 %v2189_v13 }
 0x122   : > { %v2258_v53 = vand.u32 4294901760, %v385_v48  ;;  %v2260_v54 = vand.u32 4294901760, %v384_v47  ;;  %v2262_v55 = vand.u32 4294901760, %v381_v50  ;;  %561 = vmatpush1.msra.mxu1 %v560_v44  ;;  %v566_v58 = vand.u32 4294901760, %v565_v45 }
 0x123   : > { %v572_v59 = vand.u32 4294901760, %v571_v46  ;;  %v2781_v57 = vand.u32 4294901760, %v2243_v41  ;;  %v2309_v44 = vsub.f32 %v428_v52, %v2288_v18 }
 0x124   : > { %v2269_v63 = vsub.f32 %v385_v48, %v2258_v53  ;;  %v2272_v0 = vsub.f32 %v384_v47, %v2260_v54  ;;  %v2275_v7 = vsub.f32 %v381_v50, %v2262_v55  ;;  %v2277_v8 = vpop.permute.xlu1 %327  ;;  %461 = vmatprep.subr.mxu0 %v2258_v53  ;;  %567 = vmatprep.subr.mxu1 %v566_v58  ;;  %v2280_v9 = vpop.permute.xlu0 %319 }
 0x125   : > { %v382_v15 = vsel %vm371_vm8, %v326_v31, %v2277_v8  ;;  %463 = vmatpush1.msra.mxu0 %v2260_v54  ;;  %573 = vmatpush1.msra.mxu1 %v572_v59  ;;  %v577_v17 = vsub.f32 %v2243_v41, %v2781_v57 }
 0x126   : > { %v2290_v20 = vand.u32 4294901760, %v382_v15  ;;  %v2779_v21 = vand.u32 4294901760, %v2269_v63  ;;  %v2777_v24 = vand.u32 4294901760, %v2272_v0  ;;  %v2775_v32 = vand.u32 4294901760, %v2275_v7 }
 0x127   : > { %v578_v25 = vand.u32 4294901760, %v577_v17 }
 0x128   : > { %v2296_v31 = vsub.f32 %v382_v15, %v2290_v20  ;;  %v318_v33 = vpop.permute.xlu1 %317  ;;  %465 = vmatprep.subr.mxu0 %v2290_v20  ;;  %v310_v34 = vpop.permute.xlu0 %309  ;;  %v589_v39 = vsub.f32 %v2269_v63, %v2779_v21  ;;  %v595_v42 = vsub.f32 %v2272_v0, %v2777_v24  ;;  %v607_v50 = vsub.f32 %v2275_v7, %v2775_v32 }
 0x129   : > { %v379_v43 = vsel %vm371_vm8, %v318_v33, %v2280_v9  ;;  %579 = vmatprep.subr.mxu1 %v578_v25  ;;  %467 = vmatpush1.msra.mxu0 %v2262_v55  ;;  %v2327_v25 = vand.u32 4294901760, %v2309_v44 }
 0x12a   : > { %v2311_v45 = vand.u32 4294901760, %v379_v43  ;;  %585 = vmatpush1.msra.mxu1 %v584_v38  ;;  %v590_v46 = vand.u32 4294901760, %v589_v39  ;;  %v596_v47 = vand.u32 4294901760, %v595_v42  ;;  %v2776_v48 = vand.u32 4294901760, %v2296_v31 }
 0x12c   : > { %v2318_v58 = vsub.f32 %v379_v43, %v2311_v45  ;;  %v316_v59 = vpop.permute.xlu1 %315  ;;  %469 = vmatprep.subr.mxu0 %v2311_v45  ;;  %591 = vmatprep.subr.mxu1 %v590_v46  ;;  %v308_v52 = vpop.permute.xlu0 %307  ;;  %v601_v61 = vsub.f32 %v2296_v31, %v2776_v48  ;;  %v608_v46 = vand.u32 4294901760, %v607_v50 }
 0x12d   : > { %v378_v15 = vsel %vm371_vm8, %v316_v59, %v318_v33  ;;  %v375_v17 = vsel %vm371_vm8, %v308_v52, %v310_v34  ;;  %597 = vmatpush1.msra.mxu1 %v596_v47 }
 0x12e   : > { %v2329_v38 = vand.u32 4294901760, %v378_v15  ;;  %v2331_v39 = vand.u32 4294901760, %v375_v17  ;;  %v602_v42 = vand.u32 4294901760, %v601_v61  ;;  %v2778_v43 = vand.u32 4294901760, %v2318_v58 }
 0x12f   : > { %v516_v61 = vsub.f32 %v2309_v44, %v2327_v25 }
 0x130   : > { %v2335_v32 = vsub.f32 %v378_v15, %v2329_v38  ;;  %v2338_v48 = vsub.f32 %v375_v17, %v2331_v39  ;;  %v2340_v33 = vpop.permute.xlu1 %311  ;;  %471 = vmatpush1.msra.mxu0 %v2329_v38  ;;  %603 = vmatprep.subr.mxu1 %v602_v42  ;;  %v2343_v47 = vpop.permute.xlu0 %303  ;;  %v613_v59 = vsub.f32 %v2318_v58, %v2778_v43 }
 0x131   : > { %v376_v50 = vsel %vm371_vm8, %v310_v34, %v2340_v33  ;;  %v373_v52 = vsel %vm371_vm8, %v2151_v51, %v2343_v47  ;;  %609 = vmatpush1.msra.mxu1 %v608_v46 }
 0x132   : > { %v2355_v15 = vand.u32 4294901760, %v376_v50  ;;  %v2357_v17 = vand.u32 4294901760, %v373_v52  ;;  %v614_v42 = vand.u32 4294901760, %v613_v59  ;;  %v2784_v24 = vand.u32 4294901760, %v2335_v32 }
 0x133   : > { %v2785_v43 = vand.u32 4294901760, %v2338_v48 }
 0x134   : > { %v2362_v21 = vsub.f32 %v376_v50, %v2355_v15  ;;  %v2365_v34 = vsub.f32 %v373_v52, %v2357_v17  ;;  %v300_v40 = vpop.permute.xlu1 %299  ;;  %473 = vmatprep.subr.mxu0 %v2355_v15  ;;  %615 = vmatprep.subr.mxu1 %v614_v42  ;;  %v370_v46 = vpop.permute.xlu0 %369  ;;  %v619_v57 = vsub.f32 %v2335_v32, %v2784_v24  ;;  %v2378_v50 = vand.u32 4294901760, %v516_v61 }
 0x135   : > { %v372_v59 = vsel %vm371_vm8, %v300_v40, %v2151_v51  ;;  %v2375_v37 = vsel %vm371_vm8, %v2153_v56, %v370_v46  ;;  %475 = vmatpush1.msra.mxu0 %v2331_v39  ;;  %v631_v24 = vsub.f32 %v2338_v48, %v2785_v43 }
 0x136   : > { %v2380_v52 = vand.u32 4294901760, %v372_v59  ;;  %477 = vmatprep.subr.mxu0 %v2357_v17  ;;  %v620_v42 = vand.u32 4294901760, %v619_v57  ;;  %v2786_v36 = vand.u32 4294901760, %v2362_v21  ;;  %v636_v51 = vand.u32 4294901760, %v2365_v34 }
 0x138   : > { %v2389_v56 = vsub.f32 %v372_v59, %v2380_v52  ;;  %v362_v40 = vpop.permute.xlu1 %361  ;;  %479 = vmatpush1.msra.mxu0 %v2380_v52  ;;  %621 = vmatpush1.msra.mxu1 %v620_v42  ;;  %v354_v61 = vpop.permute.xlu0 %353  ;;  %v625_v57 = vsub.f32 %v2362_v21, %v2786_v36  ;;  %v637_v59 = vsub.f32 %v2365_v34, %v636_v51 }
 0x139   : > { %v2397_v46 = vsel %vm371_vm8, %v2178_v6, %v362_v40  ;;  %v2401_v43 = vsel %vm371_vm8, %v2160_v62, %v354_v61  ;;  %702 = vmatprep.subr.mxu0 %v2173_v4  ;;  %518 = vmatmul.mubr.f32.vlgmr.msra.gmra.mxu0 %v2378_v50  ;;  %v632_v6 = vand.u32 4294901760, %v631_v24  ;;  %v2789_v4 = vand.u32 4294901760, %v2217_v28 }
 0x13a   : > { %705 = vmatpush1.msra.mxu0 %v2176_v5  ;;  %v626_v42 = vand.u32 4294901760, %v625_v57  ;;  %786 = vmatprep.mubr.f32.mxu0 %v2015_v49  ;;  %v642_v40 = vand.u32 4294901760, %v2389_v56  ;;  %v638_v36 = vand.u32 4294901760, %v637_v59  ;;  %v2790_v5 = vand.u32 4294901760, %v2220_v29 }
 0x13b   : > { %708 = vmatprep.subr.mxu0 %v2192_v14  ;;  %v2794_v14 = vand.u32 4294901760, %v2272_v0 }
 0x13c   : > { %v346_v62 = vpop.permute.xlu1 %345  ;;  %627 = vmatprep.subr.mxu1 %v626_v42  ;;  %711 = vmatpush1.msra.mxu0 %v2170_v3  ;;  %v338_v61 = vpop.permute.xlu0 %337  ;;  %v643_v24 = vsub.f32 %v2389_v56, %v642_v40 }
 0x13d   : > { %v2415_v19 = vsel %vm371_vm8, %v2222_v30, %v346_v62  ;;  %v2419_v57 = vsel %vm371_vm8, %v2195_v16, %v338_v61  ;;  %633 = vmatpush1.msra.mxu1 %v632_v6  ;;  %714 = vmatprep.subr.mxu0 %v2217_v28  ;;  %v2493_v28 = vand.u32 4294901760, %v2375_v37 }
 0x13e   : > { %639 = vmatprep.subr.mxu1 %v638_v36  ;;  %717 = vmatpush1.msra.mxu0 %v2220_v29  ;;  %v644_v59 = vand.u32 4294901760, %v643_v24  ;;  %v2788_v36 = vand.u32 4294901760, %v2170_v3  ;;  %v2792_v3 = vand.u32 4294901760, %v2213_v26  ;;  %v2505_v29 = vand.u32 4294901760, %v2397_v46 }
 0x13f   : > { %720 = vmatprep.subr.mxu0 %v2243_v41 }
 0x140   : > { %v330_v42 = vpop.permute.xlu1 %329  ;;  %723 = vmatpush1.msra.mxu0 %v2213_v26  ;;  %v322_v30 = vpop.permute.xlu0 %321  ;;  %645 = vmatpush1.msra.mxu1 %v644_v59  ;;  %v2796_v26 = vand.u32 4294901760, %v2275_v7 }
 0x141   : > { %v2430_v16 = vsel %vm371_vm8, %v2277_v8, %v330_v42  ;;  %v2434_v6 = vsel %vm371_vm8, %v2280_v9, %v322_v30  ;;  %726 = vmatprep.subr.mxu0 %v2269_v63  ;;  %680 = vmatmul.mubr.f32.vlgmr.msra.gmra.mxu1 %v2288_v18 }
 0x142   : > { %810 = vmatprep.subr.mxu1 %v2165_v1  ;;  %729 = vmatpush1.msra.mxu0 %v2272_v0 }
 0x143   : > { %812 = vmatpush1.msra.mxu1 %v2167_v2  ;;  %732 = vmatprep.subr.mxu0 %v2296_v31 }
 0x144   : > { %814 = vmatprep.subr.mxu1 %v2185_v10  ;;  %735 = vmatpush1.msra.mxu0 %v2275_v7  ;;  %v2555_v7 = vand.u32 4294901760, %v2430_v16  ;;  %v306_v8 = vpop.permute.xlu0 %305 }
 0x145   : > { %816 = vmatpush1.msra.mxu1 %v2158_v60  ;;  %738 = vmatprep.subr.mxu0 %v2318_v58 }
 0x146   : > { %818 = vmatprep.subr.mxu1 %v2208_v22  ;;  %741 = vmatpush1.msra.mxu0 %v2335_v32 }
 0x147   : > { %820 = vmatpush1.msra.mxu1 %v2210_v23  ;;  %744 = vmatprep.subr.mxu0 %v2362_v21 }
 0x148   : > { %822 = vmatprep.subr.mxu1 %v2234_v35  ;;  %747 = vmatpush1.msra.mxu0 %v2338_v48 }
 0x149   : > { %824 = vmatpush1.msra.mxu1 %v2189_v13  ;;  %750 = vmatprep.subr.mxu0 %v2365_v34 }
 0x14a   : > { %826 = vmatprep.subr.mxu1 %v2258_v53  ;;  %753 = vmatpush1.msra.mxu0 %v2389_v56 }
 0x14b   : > { %828 = vmatpush1.msra.mxu1 %v2260_v54  ;;  %789 = vmatmul.mubr.f32.vlgmr.msra.gmra.mxu0 %v2309_v44 }
 0x14c   : > { %830 = vmatprep.subr.mxu1 %v2290_v20  ;;  %904 = vmatprep.subr.mxu0 %v540_v11  ;;  %v2791_v11 = vand.u32 4294901760, %v2243_v41  ;;  %v2512_v41 = vsub.f32 %v2375_v37, %v2493_v28 }
 0x14d   : > { %832 = vmatpush1.msra.mxu1 %v2262_v55  ;;  %908 = vmatpush1.msra.mxu0 %v546_v12  ;;  %v2793_v12 = vand.u32 4294901760, %v2269_v63  ;;  %v314_v63 = vpop.permute.xlu1 %313 }
 0x14e   : > { %834 = vmatprep.subr.mxu1 %v2311_v45  ;;  %912 = vmatprep.subr.mxu0 %v552_v27  ;;  %v2795_v27 = vand.u32 4294901760, %v2296_v31  ;;  %v377_v9 = vsel %vm371_vm8, %v2340_v33, %v314_v63 }
 0x14f   : > { %836 = vmatpush1.msra.mxu1 %v2329_v38  ;;  %916 = vmatpush1.msra.mxu0 %v2788_v36 }
 0x150   : > { %838 = vmatprep.subr.mxu1 %v2355_v15  ;;  %920 = vmatprep.subr.mxu0 %v2789_v4 }
 0x151   : > { %840 = vmatpush1.msra.mxu1 %v2331_v39  ;;  %924 = vmatpush1.msra.mxu0 %v2790_v5 }
 0x152   : > { %842 = vmatprep.subr.mxu1 %v2357_v17  ;;  %928 = vmatprep.subr.mxu0 %v2791_v11 }
 0x153   : > { %844 = vmatpush1.msra.mxu1 %v2380_v52  ;;  %877 = vmatprep.mubr.f32.mxu1 %v2015_v49 }
 0x154   : > { %932 = vmatpush1.msra.mxu0 %v2792_v3  ;;  %881 = vmatmul.mubr.f32.vlgmr.msra.gmra.mxu1 %v2327_v25 }
 0x155   : > { %936 = vmatprep.subr.mxu0 %v2793_v12  ;;  %1028 = vmatprep.subr.mxu1 %v2165_v1  ;;  %v2797_v1 = vand.u32 4294901760, %v2318_v58  ;;  %v2588_v58 = vand.u32 4294901760, %v377_v9 }
 0x156   : > { %940 = vmatpush1.msra.mxu0 %v2794_v14  ;;  %1030 = vmatpush1.msra.mxu1 %v2167_v2  ;;  %v2798_v2 = vand.u32 4294901760, %v2335_v32  ;;  %v374_v32 = vsel %vm371_vm8, %v2343_v47, %v306_v8 }
 0x157   : > { %944 = vmatprep.subr.mxu0 %v2795_v27  ;;  %1032 = vmatprep.subr.mxu1 %v2185_v10  ;;  %v2799_v10 = vand.u32 4294901760, %v2362_v21  ;;  %v2572_v21 = vand.u32 4294901760, %v2434_v6  ;;  %v2602_v47 = vand.u32 4294901760, %v374_v32  ;;  %v2613_v34 = vsub.f32 %v377_v9, %v2588_v58 }
 0x158   : > { %948 = vmatpush1.msra.mxu0 %v2796_v26  ;;  %1034 = vmatpush1.msra.mxu1 %v2158_v60  ;;  %v2800_v60 = vand.u32 4294901760, %v2338_v48  ;;  %v2586_v48 = vsub.f32 %v2430_v16, %v2555_v7  ;;  %v1655_v9 = vlaneseq }
 0x159   : > { %952 = vmatprep.subr.mxu0 %v2797_v1  ;;  %1036 = vmatprep.subr.mxu1 %v2208_v22  ;;  %v2518_v22 = vand.u32 4294901760, %v2401_v43  ;;  %v2600_v33 = vsub.f32 %v2434_v6, %v2572_v21  ;;  %v1253_v61 = vand.u32 4294901760, %v2613_v34 }
 0x15a   : > { %956 = vmatpush1.msra.mxu0 %v2798_v2  ;;  %1038 = vmatpush1.msra.mxu1 %v2210_v23  ;;  %v2528_v23 = vsub.f32 %v2397_v46, %v2505_v29  ;;  %v2623_v46 = vsub.f32 %v374_v32, %v2602_v47 }
 0x15b   : > { %960 = vmatprep.subr.mxu0 %v2799_v10  ;;  %1040 = vmatprep.subr.mxu1 %v2234_v35  ;;  %v2531_v35 = vand.u32 4294901760, %v2415_v19  ;;  %v2540_v37 = vsub.f32 %v2401_v43, %v2518_v22  ;;  %v1246_v56 = vand.u32 4294901760, %v2600_v33  ;;  %v1254_v30 = vsub.f32 %v2613_v34, %v1253_v61 }
 0x15c   : > { %964 = vmatpush1.msra.mxu0 %v2800_v60  ;;  %1042 = vmatpush1.msra.mxu1 %v2189_v13  ;;  %v1204_v13 = vand.u32 4294901760, %v2512_v41  ;;  %v1260_v59 = vand.u32 4294901760, %v2623_v46 }
 0x15d   : > { %968 = vmatprep.subr.mxu0 %v636_v51  ;;  %1044 = vmatprep.subr.mxu1 %v2258_v53  ;;  %v2543_v53 = vand.u32 4294901760, %v2419_v57  ;;  %v2552_v0 = vsub.f32 %v2415_v19, %v2531_v35  ;;  %v1218_v19 = vand.u32 4294901760, %v2540_v37  ;;  %v1247_v24 = vsub.f32 %v2600_v33, %v1246_v56 }
 0x15e   : > { %972 = vmatpush1.msra.mxu0 %v642_v40  ;;  %1005 = vmatprep.mubr.f32.mxu0 %v2015_v49  ;;  %v1261_v6 = vsub.f32 %v2623_v46, %v1260_v59  ;;  %v1255_v4 = vand.u32 4294901760, %v1254_v30 }
 0x15f   : > { %1046 = vmatpush1.msra.mxu1 %v2260_v54  ;;  %1007 = vmatmul.mubr.f32.vlgmr.msra.gmra.mxu0 %v2288_v18  ;;  %v1211_v54 = vand.u32 4294901760, %v2528_v23  ;;  %v1248_v36 = vand.u32 4294901760, %v1247_v24 }
 0x160   : > { %1048 = vmatprep.subr.mxu1 %v2290_v20  ;;  %1852 = vmatprep.subr.mxu0 %v2015_v49  ;;  %v2569_v20 = vsub.f32 %v2419_v57, %v2543_v53  ;;  %v1262_v5 = vand.u32 4294901760, %v1261_v6 }
 0x161   : > { %1050 = vmatpush1.msra.mxu1 %v2262_v55  ;;  %1853 = vmatpush3.msra.mxu0 %v2493_v28  ;;  %v1205_v55 = vsub.f32 %v2512_v41, %v1204_v13  ;;  %v1212_v31 = vsub.f32 %v2528_v23, %v1211_v54 }
 0x162   : > { %1052 = vmatprep.subr.mxu1 %v2311_v45  ;;  %1854 = vmatprep.subr.mxu0 %v2015_v49  ;;  %v1225_v45 = vand.u32 4294901760, %v2552_v0  ;;  %v1232_v43 = vand.u32 4294901760, %v2569_v20 }
 0x163   : > { %1054 = vmatpush1.msra.mxu1 %v2329_v38  ;;  %1855 = vmatpush3.msra.mxu0 %v2505_v29  ;;  %v1206_v38 = vand.u32 4294901760, %v1205_v55 }
 0x164   : > { %1056 = vmatprep.subr.mxu1 %v2355_v15  ;;  %1856 = vmatprep.subr.mxu0 %v2015_v49  ;;  %v1226_v15 = vsub.f32 %v2552_v0, %v1225_v45  ;;  %v1233_v51 = vsub.f32 %v2569_v20, %v1232_v43 }
 0x165   : > { %1058 = vmatpush1.msra.mxu1 %v2331_v39  ;;  %1857 = vmatpush3.msra.mxu0 %v2518_v22  ;;  %v1219_v39 = vsub.f32 %v2540_v37, %v1218_v19 }
 0x166   : > { %1060 = vmatprep.subr.mxu1 %v2357_v17  ;;  %1858 = vmatprep.subr.mxu0 %v2015_v49  ;;  %v1239_v17 = vand.u32 4294901760, %v2586_v48  ;;  %v1227_v57 = vand.u32 4294901760, %v1226_v15  ;;  %v1234_v42 = vand.u32 4294901760, %v1233_v51 }
 0x167   : > { %1062 = vmatpush1.msra.mxu1 %v2380_v52  ;;  %1095 = vmatprep.mubr.f32.mxu1 %v2015_v49  ;;  %v1213_v52 = vand.u32 4294901760, %v1212_v31  ;;  %v1220_v40 = vand.u32 4294901760, %v1219_v39  ;;  %v1653_v31 = vld [vmem:[%s2772_s2] sm:$0x7] }
 0x168   : > { %1859 = vmatpush3.msra.mxu0 %v2531_v35  ;;  %1097 = vmatmul.mubr.f32.vlgmr.msra.gmra.mxu1 %v2288_v18  ;;  %v1240_v62 = vsub.f32 %v2586_v48, %v1239_v17 }
 0x169   : > { %1860 = vmatprep.subr.mxu0 %v2015_v49  ;;  %1873 = vmatprep.subr.mxu1 %v2015_v49 }
 0x16a   : > { %1861 = vmatpush3.msra.mxu0 %v2543_v53  ;;  %1874 = vmatpush3.msra.mxu1 %v1206_v38  ;;  %v1241_v16 = vand.u32 4294901760, %v1240_v62 }
 0x16b   : > { %1862 = vmatprep.subr.mxu0 %v2015_v49  ;;  %1875 = vmatprep.subr.mxu1 %v2015_v49 }
 0x16c   : > { %1863 = vmatpush3.msra.mxu0 %v2555_v7  ;;  %1876 = vmatpush3.msra.mxu1 %v1213_v52 }
 0x16d   : > { %1864 = vmatprep.subr.mxu0 %v2015_v49  ;;  %1877 = vmatprep.subr.mxu1 %v2015_v49 }
 0x16e   : > { %1865 = vmatpush3.msra.mxu0 %v2572_v21  ;;  %1878 = vmatpush3.msra.mxu1 %v1220_v40 }
 0x16f   : > { %1866 = vmatprep.subr.mxu0 %v2015_v49  ;;  %1879 = vmatprep.subr.mxu1 %v2015_v49 }
 0x170   : > { %1867 = vmatpush3.msra.mxu0 %v2588_v58  ;;  %1880 = vmatpush3.msra.mxu1 %v1227_v57 }
 0x171   : > { %1868 = vmatprep.subr.mxu0 %v2015_v49  ;;  %1881 = vmatprep.subr.mxu1 %v2015_v49 }
 0x172   : > { %1869 = vmatpush3.msra.mxu0 %v2602_v47  ;;  %1882 = vmatpush3.msra.mxu1 %v1234_v42 }
 0x173   : > { %1870 = vmatprep.mubr.msk.f32.mxu0 %vm2016_vm10, %v2015_v49  ;;  %1883 = vmatprep.subr.mxu1 %v2015_v49 }
 0x174   : > { %1894 = vmatprep.subr.mxu0 %v2015_v49  ;;  %1871 = vmatmul.mubr.f32.vlgmr.msra.gmra.mxu0 %v2378_v50 }
 0x175   : > { %1884 = vmatpush3.msra.mxu1 %v1241_v16  ;;  %1895 = vmatpush3.msra.mxu0 %v2512_v41 }
 0x176   : > { %1885 = vmatprep.subr.mxu1 %v2015_v49  ;;  %1896 = vmatprep.subr.mxu0 %v2015_v49 }
 0x177   : > { %1886 = vmatpush3.msra.mxu1 %v1248_v36  ;;  %1897 = vmatpush3.msra.mxu0 %v2528_v23 }
 0x178   : > { %1887 = vmatprep.subr.mxu1 %v2015_v49  ;;  %1898 = vmatprep.subr.mxu0 %v2015_v49 }
 0x179   : > { %1888 = vmatpush3.msra.mxu1 %v1255_v4  ;;  %1899 = vmatpush3.msra.mxu0 %v2540_v37 }
 0x17a   : > { %1889 = vmatprep.subr.mxu1 %v2015_v49  ;;  %1900 = vmatprep.subr.mxu0 %v2015_v49 }
 0x17b   : > { %1890 = vmatpush3.msra.mxu1 %v1262_v5  ;;  %1891 = vmatprep.mubr.msk.f32.mxu1 %vm2016_vm10, %v2015_v49 }
 0x17c   : > { %1901 = vmatpush3.msra.mxu0 %v2552_v0  ;;  %1892 = vmatmul.mubr.f32.vlgmr.msra.gmra.mxu1 %v2288_v18 }
 0x17d   : > { %1902 = vmatprep.subr.mxu0 %v2015_v49  ;;  %1915 = vmatprep.subr.mxu1 %v2015_v49 }
 0x17e   : > { %1903 = vmatpush3.msra.mxu0 %v2569_v20  ;;  %1916 = vmatpush3.msra.mxu1 %v2493_v28 }
 0x17f   : > { %1904 = vmatprep.subr.mxu0 %v2015_v49  ;;  %1917 = vmatprep.subr.mxu1 %v2015_v49 }
 0x180   : > { %1905 = vmatpush3.msra.mxu0 %v2586_v48  ;;  %1918 = vmatpush3.msra.mxu1 %v2505_v29 }
 0x181   : > { %1906 = vmatprep.subr.mxu0 %v2015_v49  ;;  %1919 = vmatprep.subr.mxu1 %v2015_v49 }
 0x182   : > { %1907 = vmatpush3.msra.mxu0 %v2600_v33  ;;  %1920 = vmatpush3.msra.mxu1 %v2518_v22 }
 0x183   : > { %1908 = vmatprep.subr.mxu0 %v2015_v49  ;;  %1921 = vmatprep.subr.mxu1 %v2015_v49 }
 0x184   : > { %1909 = vmatpush3.msra.mxu0 %v2613_v34  ;;  %1922 = vmatpush3.msra.mxu1 %v2531_v35 }
 0x185   : > { %1910 = vmatprep.subr.mxu0 %v2015_v49  ;;  %1923 = vmatprep.subr.mxu1 %v2015_v49 }
 0x186   : > { %1911 = vmatpush3.msra.mxu0 %v2623_v46  ;;  %1912 = vmatprep.mubr.msk.f32.mxu0 %vm2016_vm10, %v2015_v49 }
 0x187   : > { %1924 = vmatpush3.msra.mxu1 %v2543_v53  ;;  %1913 = vmatmul.mubr.f32.vlgmr.msra.gmra.mxu0 %v2309_v44 }
 0x188   : > { %1925 = vmatprep.subr.mxu1 %v2015_v49  ;;  %1936 = vmatprep.subr.mxu0 %v2015_v49 }
 0x189   : > { %1926 = vmatpush3.msra.mxu1 %v2555_v7  ;;  %1937 = vmatpush3.msra.mxu0 %v1204_v13 }
 0x18a   : > { %1927 = vmatprep.subr.mxu1 %v2015_v49  ;;  %1938 = vmatprep.subr.mxu0 %v2015_v49 }
 0x18b   : > { %1928 = vmatpush3.msra.mxu1 %v2572_v21  ;;  %1939 = vmatpush3.msra.mxu0 %v1211_v54 }
 0x18c   : > { %1929 = vmatprep.subr.mxu1 %v2015_v49  ;;  %1940 = vmatprep.subr.mxu0 %v2015_v49 }
 0x18d   : > { %1930 = vmatpush3.msra.mxu1 %v2588_v58  ;;  %1941 = vmatpush3.msra.mxu0 %v1218_v19  ;;  %v1656_v19 = vshrl.u32 %v1655_v9, 7 }
 0x18e   : > { %1931 = vmatprep.subr.mxu1 %v2015_v49  ;;  %1942 = vmatprep.subr.mxu0 %v2015_v49 }
 0x18f   : > { %1932 = vmatpush3.msra.mxu1 %v2602_v47  ;;  %1933 = vmatprep.mubr.msk.f32.mxu1 %vm2016_vm10, %v2015_v49  ;;  %v1661_v20 = vsub.s32 1, %v1656_v19  ;;  %v1665_v39 = vsub.s32 2, %v1656_v19 }
 0x190   : > { %1943 = vmatpush3.msra.mxu0 %v1225_v45  ;;  %1934 = vmatmul.mubr.f32.vlgmr.msra.gmra.mxu1 %v2327_v25 }
 0x191   : > { %1944 = vmatprep.subr.mxu0 %v2015_v49  ;;  %1957 = vmatprep.subr.mxu1 %v2015_v49  ;;  %v1662_v48 = vrot.slane %v1653_v31, %v1661_v20 }
 0x192   : > { %1945 = vmatpush3.msra.mxu0 %v1232_v43  ;;  %1958 = vmatpush3.msra.mxu1 %v2493_v28 }
 0x193   : > { %1946 = vmatprep.subr.mxu0 %v2015_v49  ;;  %1959 = vmatprep.subr.mxu1 %v2015_v49 }
 0x194   : > { %1947 = vmatpush3.msra.mxu0 %v1239_v17  ;;  %1960 = vmatpush3.msra.mxu1 %v2505_v29  ;;  %v1666_v17 = vrot.slane %v1653_v31, %v1665_v39 }
 0x195   : > { %1948 = vmatprep.subr.mxu0 %v2015_v49  ;;  %1961 = vmatprep.subr.mxu1 %v2015_v49 }
 0x196   : > { %1949 = vmatpush3.msra.mxu0 %v1246_v56  ;;  %1962 = vmatpush3.msra.mxu1 %v2518_v22 }
 0x197   : > { %1950 = vmatprep.subr.mxu0 %v2015_v49  ;;  %1963 = vmatprep.subr.mxu1 %v2015_v49 }
 0x198   : > { %1951 = vmatpush3.msra.mxu0 %v1253_v61  ;;  %1964 = vmatpush3.msra.mxu1 %v2531_v35 }
 0x199   : > { %1952 = vmatprep.subr.mxu0 %v2015_v49  ;;  %1965 = vmatprep.subr.mxu1 %v2015_v49 }
 0x19a   : > { %1953 = vmatpush3.msra.mxu0 %v1260_v59  ;;  %1954 = vmatprep.mubr.msk.f32.mxu0 %vm2016_vm10, %v2015_v49 }
 0x19b   : > { %1966 = vmatpush3.msra.mxu1 %v2543_v53  ;;  %1955 = vmatmul.mubr.f32.vlgmr.msra.gmra.mxu0 %v2288_v18 }
 0x19c   : > { %1967 = vmatprep.subr.mxu1 %v2015_v49  ;;  %1975 = vmatprep.mubr.msk.f32.mxu1 %vm2016_vm10, %v2015_v49 }
 0x19d   : > { %1968 = vmatpush3.msra.mxu1 %v2555_v7 }
 0x19e   : > { %1969 = vmatprep.subr.mxu1 %v2015_v49 }
 0x19f   : > { %1970 = vmatpush3.msra.mxu1 %v2572_v21  ;;  %v1657_v21 = vsub.s32 0, %v1656_v19 }
 0x1a0   : > { %1971 = vmatprep.subr.mxu1 %v2015_v49 }
 0x1a1   : > { %1972 = vmatpush3.msra.mxu1 %v2588_v58  ;;  %v1658_v43 = vrot.slane %v1653_v31, %v1657_v21 }
 0x1a2   : > { %1973 = vmatprep.subr.mxu1 %v2015_v49 }
 0x1a3   : > { %1974 = vmatpush3.msra.mxu1 %v2602_v47 }
 0x1a4   : > { %1976 = vmatmul.mubr.f32.vlgmr.msra.gmra.mxu1 %v2288_v18 }
 0x1f9   : > { %v519_v44 = vpop.f32.mrf.mxu0 }
 0x1fb   : > { %v521_v25 = vpop.f32.mrf.mxu0 }
 0x201   : > { %v681_v50 = vpop.f32.mrf.mxu1 }
 0x202   : > { %v682_v27 = vadd.f32 %v681_v50, %v519_v44 }
 0x203   : > { %v683_v3 = vpop.f32.mrf.mxu1 }
 0x204   : > { %v684_v26 = vadd.f32 %v683_v3, %v521_v25 }
 0x20b   : > { %v790_v11 = vpop.f32.mrf.mxu0 }
 0x20c   : > { %v791_v1 = vadd.f32 %v790_v11, %v682_v27 }
 0x20d   : > { %v792_v12 = vpop.f32.mrf.mxu0 }
 0x20e   : > { %v793_v29 = vadd.f32 %v792_v12, %v684_v26 }
 0x214   : > { %v882_v14 = vpop.f32.mrf.mxu1 }
 0x215   : > { %v883_v10 = vadd.f32 %v882_v14, %v791_v1 }
 0x216   : > { %v884_v2 = vpop.f32.mrf.mxu1 }
 0x217   : > { %v885_v41 = vadd.f32 %v884_v2, %v793_v29 }
 0x21f   : > { %v1008_v28 = vpop.f32.mrf.mxu0 }
 0x220   : > { %v1009_v60 = vadd.f32 %v1008_v28, %v883_v10 }
 0x221   : > { %v1010_v49 = vpop.f32.mrf.mxu0 }
 0x222   : > { %v1011_v22 = vadd.f32 %v1010_v49, %v885_v41 }
 0x228   : > { %v1098_v18 = vpop.f32.mrf.mxu1 }
 0x229   : > { %v1099_v23 = vadd.f32 %v1098_v18, %v1009_v60 }
 0x22a   : > { %v1100_v35 = vpop.f32.mrf.mxu1 }
 0x22b   : > { %1691 = vst [vmem:[%s2755_s9] sm:$0xff] %v1099_v23  ;;  %v1101_v13 = vadd.f32 %v1100_v35, %v1011_v22  ;;  %v1670_v34 = vmul.f32 %v1658_v43, %v1099_v23 }
 0x22d   : > { %1692 = vst [vmem:[%s2755_s9 + $0x8] sm:$0xff] %v1101_v13  ;;  %v1671_v47 = vmul.f32 %v1662_v48, %v1101_v13  ;;  %v1679_v62 = vmul.f32 %v1670_v34, %v1099_v23 }
 0x22f   : > { %v1680_v56 = vmul.f32 %v1671_v47, %v1101_v13  ;;  %v1673_v61 = vadd.f32 %v1671_v47, %v1670_v34 }
 0x231   : > { %v1682_v42 = vadd.f32 %v1680_v56, %v1679_v62 }
 0x234   : > { %v1183_v37 = vpop.f32.mrf.mxu0 }
 0x236   : > { %v1872_v53 = vpop.f32.mrf.mxu0 }
 0x23c   : > { %v1299_v63 = vpop.f32.mrf.mxu1 }
 0x23d   : > { %v1300_v45 = vadd.f32 %v1299_v63, %v1183_v37 }
 0x23e   : > { %v1893_v54 = vpop.f32.mrf.mxu1 }
 0x247   : > { %v1389_v0 = vpop.f32.mrf.mxu0 }
 0x248   : > { %v1390_v38 = vadd.f32 %v1389_v0, %v1300_v45 }
 0x249   : > { %v1914_v7 = vpop.f32.mrf.mxu0 }
 0x250   : > { %v1471_v8 = vpop.f32.mrf.mxu1 }
 0x251   : > { %v1472_v33 = vadd.f32 %v1471_v8, %v1390_v38 }
 0x252   : > { %v1935_v55 = vpop.f32.mrf.mxu1 }
 0x25b   : > { %v1569_v32 = vpop.f32.mrf.mxu0 }
 0x25c   : > { %v1570_v15 = vadd.f32 %v1569_v32, %v1472_v33 }
 0x25d   : > { %v1956_v58 = vpop.f32.mrf.mxu0 }
 0x264   : > { %v1649_v52 = vpop.f32.mrf.mxu1 }
 0x265   : > { %v1650_v51 = vadd.f32 %v1649_v52, %v1570_v15 }
 0x266   : > { %v1977_v46 = vpop.f32.mrf.mxu1 }
 0x267   : > { %v1672_v40 = vmul.f32 %v1666_v17, %v1650_v51  ;;  %1693 = vst.msk [vmem:[%s2755_s9 + $0x10] sm:$0xff] %vm1674_vm11, %v1650_v51 }
 0x269   : > { %v1675_v57 = vsel %vm1674_vm11, %v1672_v40, 0.0  ;;  %v1681_v24 = vmul.f32 %v1672_v40, %v1650_v51 }
 0x26a   : > { %v1676_v59 = vadd.f32 %v1675_v57, %v1673_v61 }
 0x26b   : > { %v1683_v30 = vsel %vm1674_vm11, %v1681_v24, 0.0 }
 0x26c   : > { %1677 = vadd.xlane.f32.xlu1 %v1676_v59  ;;  %v1684_v16 = vadd.f32 %v1683_v30, %v1682_v42 }
 0x26e   : > { %1685 = vadd.xlane.f32.xlu0 %v1684_v16 }
 0x2f5   : > { %v1678_v6 = vpop.xlane.xlu1 %1677 }
 0x2f7   : > { %v1686_v36 = vpop.xlane.xlu0 %1685 }
 0x2f8   : > { %v1688_v4 = vsel %vm1687_vm12, %v1678_v6, %v1686_v36 }
 0x2f9   : > { %1690 = vst.msk [vmem:[%s208_s17] sm:$0xff] %vm1689_vm13, %v1688_v4 }
 0x2fa PF: > { %s15_s15 = sadd.s32 1, %s2004_s15  }
 0x2fb   : > { %p12_p4 = scmp.ge.s32.totalorder %s15_s15, 4  }
 0x2fd   :  { %14 = sbr.rel (!%p12_p4) target bundleno = 1 (0x1), region = 74 }

// kernel: residual_block.4
= control target key start
LH: loop header
LB: loop body
LE: loop exit
PB: predicated region body
PF: predicated region fallthrough
CT: control target
= control target key end

     0   :  { %s2110_s18 = smov 0   ;;  %s2867_s0 = inlined_call_operand.vmem [shape: f32[2,8,288], index: 0, kind: input, shape index: {}]   ;;  %s2868_s1 = inlined_call_operand.vmem [shape: f32[8,72], index: 1, kind: input, shape index: {}]   ;;  %s2869_s2 = inlined_call_operand.vmem [shape: f32[1,288], index: 2, kind: input, shape index: {}]   ;;  %s2870_s3 = inlined_call_operand.vmem [shape: f32[1,8,2], index: 3, kind: input, shape index: {}]   ;;  %s2871_s4 = inlined_call_operand.vmem [shape: f32[2,8,288], index: 4, kind: output, shape index: {0}]   ;;  %s2872_s5 = inlined_call_operand.vmem [shape: f32[2,8,2], index: 5, kind: output, shape index: {1}]  }
   0x1 LB: > { %s1838_s19 = sadd.s32 4294967295, %s2065_s18   ;;  %p1842_p0 = scmp.ge.s32.totalorder %s2065_s18, 1  ;;  %s2065_s18 = sphi %s2110_s18, %s16_s18  }
   0x2   : > { %p190_p1 = scmp.lt.s32.totalorder %s2065_s18, 3 }
   0x4   : > { %p191_p2 = pnand %p1842_p0, %p190_p1 }
   0x5   : > { %s2069_s22 = smov (!%p191_p2), 110   ;;  %s2071_s23 = smov (!%p191_p2), 126  }
   0x6   : > { %194 = sbr.rel (%p191_p2) target bundleno = 899 (0x383), region = 36  ;;  %p222_p3 = scmp.lt.s32.totalorder (!%p191_p2), %s1838_s19, 1 }
   0x7   : > { %s2072_s30 = smov (!%p191_p2), 91   ;;  %s2073_s6 = smov (!%p191_p2), 90  }
   0x8   : > { %s2074_s7 = smov (!%p191_p2), 92   ;;  %s2075_s8 = smov (!%p191_p2), 108  }
   0x9   : > { %s2076_s9 = smov (!%p191_p2), 109   ;;  %s2077_s10 = smov (!%p191_p2), 127  }
   0xa   : > { %s2078_s11 = smov (!%p191_p2), 19  }
   0xb   : > { %v236_v0 = vld [vmem:[%s2870_s3] sm:$0xff]  ;;  %v2067_v1 = vmov 0   ;;  %vm279_vm0 = vcmask 417024   ;;  %v2887_v2 = vmov 0.0   ;;  %v2070_v3 = vmov 1   ;;  %s2913_s19 = smov (!%p222_p3, %s1838_s19), 1 }
   0xc   : > { %2056 = vset.pattern.permute.xlu0 %v2067_v1  ;;  %280 = vst.msk [vmem:[#allocation2 + $0x18] sm:$0xff] %vm279_vm0, %v2887_v2  ;;  %278 = vst [vmem:[#allocation2] sm:$0xff] %v2887_v2  ;;  %317 = vrot.lane.b32.xlu1 %v2887_v2, %s2069_s22  ;;  %v260_v4 = vlaneseq  ;;  %s2034_s24 = smul.u32 24, %s2913_s19  ;;  %v237_v12 = vld [vmem:[%s2869_s2] sm:$0x7]  ;;  %vm283_vm1 = vcmask 261120  }
   0xd   : > { %243 = vperm.xlu0 %2056, %v236_v0   ;;  %588 = vmatprep.mubr.f32.mxu0 %v2887_v2  ;;  %vm371_vm2 = vcmask 736256   ;;  %vm362_vm3 = vcmask 744448   ;;  %vm353_vm4 = vcmask 752640   ;;  %vm344_vm5 = vcmask 883712   ;;  %s1845_s17 = sshll.u32 %s2913_s19, 3 }
   0xe   : > { %754 = vmatprep.mubr.f32.mxu1 %v2887_v2  ;;  %v261_v5 = vshrl.u32 %v260_v4, 7  ;;  %s226_s27 = scalar_lea.vmem %s2867_s0, %s2034_s24  ;;  %vm335_vm6 = vcmask 891904   ;;  %vm325_vm7 = vcmask 900096   ;;  %vm313_vm8 = vcmask 1031168   ;;  %s231_s16 = scalar_lea.vmem %s2871_s4, %s2034_s24 }
   0xf   : > { %v238_v7 = vld [vmem:[%s226_s27] sm:$0xff]  ;;  %v239_v8 = vld [vmem:[%s226_s27 + $0x8] sm:$0xff]  ;;  %v240_v9 = vld [vmem:[%s226_s27 + $0x10] sm:$0xff]  ;;  %vm301_vm9 = vcmask 1039360   ;;  %vm447_vm10 = vcmask 154624   ;;  %vm502_vm11 = vcmask 588800  }
  0x10   : > { %305 = vrot.lane.b32.xlu1 %v2887_v2, %s2071_s23  ;;  %v262_v10 = vsub.s32 0, %v261_v5  ;;  %v266_v11 = vsub.s32 1, %v261_v5  ;;  %v270_v13 = vsub.s32 2, %v261_v5  ;;  %vm2079_vm12 = vmmov 0  }
  0x11   : > { %2057 = vset.pattern.permute.xlu0 %v2070_v3  ;;  %vm1745_vm13 = vcmask 7168   ;;  %vm1747_vm14 = vcmask 15360  }
  0x12   : > { %250 = vperm.xlu0 %2057, %v236_v0   ;;  %v2140_v17 = vrot.slane %v237_v12, %v262_v10  ;;  %v2142_v18 = vrot.slane %v237_v12, %v266_v11  ;;  %v2144_v20 = vrot.slane %v237_v12, %v270_v13 }
  0x7e   : > { %v318_v31 = vpop.permute.xlu1 %317 }
  0x82   : > { %v2178_v32 = vpop.permute.xlu1 %305 }
  0x88   : > { %v244_v6 = vpop.permute.xlu0 %243 }
  0x89   : > { %v246_v14 = vmul.f32 %v244_v6, %v238_v7  ;;  %v247_v15 = vmul.f32 %v244_v6, %v239_v8  ;;  %v248_v16 = vmul.f32 %v244_v6, %v240_v9 }
  0x8d   : > { %v251_v19 = vpop.permute.xlu0 %250 }
  0x8e   : > { %v253_v21 = vadd.f32 %v251_v19, %v246_v14  ;;  %v254_v22 = vadd.f32 %v251_v19, %v247_v15  ;;  %v255_v23 = vadd.f32 %v251_v19, %v248_v16 }
  0x90   : > { %v256_v24 = vmax.f32 %v253_v21, 0.0  ;;  %v257_v25 = vmax.f32 %v254_v22, 0.0  ;;  %v258_v26 = vmax.f32 %v255_v23, 0.0 }
  0x92   : > { %v275_v27 = vmul.f32 %v2140_v17, %v256_v24  ;;  %v2148_v28 = vmul.f32 %v2142_v18, %v257_v25  ;;  %v277_v29 = vmul.f32 %v2144_v20, %v258_v26 }
  0x94   : > { %284 = vst.msk [vmem:[#allocation2 + $0x18] sm:$0xff] %vm283_vm1, %v277_v29  ;;  %356 = vrot.lane.b32.xlu0 %v275_v27, %s2072_s30  ;;  %365 = vrot.lane.b32.xlu1 %v275_v27, %s2073_s6 }
  0x98   : > { %367 = vrot.lane.b32.xlu1 %v2148_v28, %s2073_s6 }
  0x9b   : > { %v2153_v30 = vld [vmem:[#allocation2 + $0x18] sm:$0xff] }
  0x9c   : > { %360 = vrot.lane.b32.xlu0 %v2153_v30, %s2072_s30  ;;  %369 = vrot.lane.b32.xlu1 %v2153_v30, %s2073_s6 }
  0xa0   : > { %349 = vrot.lane.b32.xlu0 %v2148_v28, %s2074_s7  ;;  %358 = vrot.lane.b32.xlu1 %v2148_v28, %s2072_s30 }
  0xa4   : > { %338 = vrot.lane.b32.xlu0 %v275_v27, %s2075_s8  ;;  %347 = vrot.lane.b32.xlu1 %v275_v27, %s2074_s7 }
  0xa8   : > { %342 = vrot.lane.b32.xlu0 %v2153_v30, %s2075_s8  ;;  %351 = vrot.lane.b32.xlu1 %v2153_v30, %s2074_s7 }
  0xac   : > { %331 = vrot.lane.b32.xlu0 %v2148_v28, %s2076_s9  ;;  %340 = vrot.lane.b32.xlu1 %v2148_v28, %s2075_s8 }
  0xb0   : > { %319 = vrot.lane.b32.xlu0 %v275_v27, %s2069_s22  ;;  %329 = vrot.lane.b32.xlu1 %v275_v27, %s2076_s9 }
  0xb4   : > { %323 = vrot.lane.b32.xlu0 %v2153_v30, %s2069_s22  ;;  %333 = vrot.lane.b32.xlu1 %v2153_v30, %s2076_s9 }
  0xb8   : > { %307 = vrot.lane.b32.xlu0 %v275_v27, %s2071_s23  ;;  %321 = vrot.lane.b32.xlu1 %v2148_v28, %s2069_s22  ;;  %s235_s22 = scalar_lea.vmem %s2872_s5, %s1845_s17 }
  0xbc   : > { %311 = vrot.lane.b32.xlu0 %v2153_v30, %s2071_s23  ;;  %309 = vrot.lane.b32.xlu1 %v2148_v28, %s2071_s23 }
  0xc0   : > { %295 = vrot.lane.b32.xlu0 %v275_v27, %s2077_s10  ;;  %297 = vrot.lane.b32.xlu1 %v2148_v28, %s2077_s10 }
  0xc4   : > { %299 = vrot.lane.b32.xlu0 %v2153_v30, %s2077_s10  ;;  %293 = vrot.lane.b32.xlu1 %v2887_v2, %s2077_s10 }
  0xc8   : > { %377 = vrot.lane.b32.xlu0 %v275_v27, %s2078_s11 }
 0x106   : > { %v357_v33 = vpop.permute.xlu0 %356  ;;  %v366_v34 = vpop.permute.xlu1 %365 }
 0x107   : > { %431 = vrot.lane.b32.xlu1 %v357_v33, %s2078_s11  ;;  %439 = vrot.lane.b32.xlu0 %v366_v34, %s2078_s11 }
 0x10a   : > { %v368_v35 = vpop.permute.xlu1 %367 }
 0x10b   : > { %v372_v54 = vsel %vm371_vm2, %v366_v34, %v368_v35 }
 0x10e   : > { %v2182_v36 = vpop.permute.xlu0 %360  ;;  %v2184_v37 = vpop.permute.xlu1 %369 }
 0x10f   : > { %v373_v43 = vsel %vm371_vm2, %v368_v35, %v2184_v37 }
 0x112   : > { %v350_v38 = vpop.permute.xlu0 %349  ;;  %v359_v39 = vpop.permute.xlu1 %358 }
 0x113   : > { %v363_v46 = vsel %vm362_vm3, %v357_v33, %v359_v39  ;;  %v364_v57 = vsel %vm362_vm3, %v359_v39, %v2182_v36 }
 0x116   : > { %v339_v40 = vpop.permute.xlu0 %338  ;;  %v348_v41 = vpop.permute.xlu1 %347 }
 0x117   : > { %415 = vrot.lane.b32.xlu1 %v339_v40, %s2078_s11  ;;  %423 = vrot.lane.b32.xlu0 %v348_v41, %s2078_s11  ;;  %v354_v60 = vsel %vm353_vm4, %v348_v41, %v350_v38 }
 0x11a   : > { %v2188_v42 = vpop.permute.xlu0 %342  ;;  %v352_v44 = vpop.permute.xlu1 %351 }
 0x11b   : > { %443 = vrot.lane.b32.xlu1 %v373_v43, %s2078_s11  ;;  %v355_v49 = vsel %vm353_vm4, %v350_v38, %v352_v44 }
 0x11e   : > { %v332_v45 = vpop.permute.xlu0 %331  ;;  %v341_v47 = vpop.permute.xlu1 %340 }
 0x11f   : > { %433 = vrot.lane.b32.xlu1 %v363_v46, %s2078_s11  ;;  %v345_v52 = vsel %vm344_vm5, %v339_v40, %v341_v47  ;;  %v346_v0 = vsel %vm344_vm5, %v341_v47, %v2188_v42 }
 0x122   : > { %v320_v48 = vpop.permute.xlu0 %319  ;;  %v330_v50 = vpop.permute.xlu1 %329 }
 0x123   : > { %427 = vrot.lane.b32.xlu1 %v355_v49, %s2078_s11  ;;  %407 = vrot.lane.b32.xlu0 %v330_v50, %s2078_s11  ;;  %v326_v63 = vsel %vm325_vm7, %v318_v31, %v320_v48  ;;  %v336_v4 = vsel %vm335_vm6, %v330_v50, %v332_v45 }
 0x126   : > { %v324_v51 = vpop.permute.xlu0 %323  ;;  %v334_v53 = vpop.permute.xlu1 %333 }
 0x127   : > { %417 = vrot.lane.b32.xlu1 %v345_v52, %s2078_s11  ;;  %441 = vrot.lane.b32.xlu0 %v372_v54, %s2078_s11  ;;  %v337_v55 = vsel %vm335_vm6, %v332_v45, %v334_v53 }
 0x12a   : > { %v322_v56 = vpop.permute.xlu1 %321  ;;  %v308_v58 = vpop.permute.xlu0 %307 }
 0x12b   : > { %411 = vrot.lane.b32.xlu1 %v337_v55, %s2078_s11  ;;  %435 = vrot.lane.b32.xlu0 %v364_v57, %s2078_s11  ;;  %v327_v59 = vsel %vm325_vm7, %v320_v48, %v322_v56  ;;  %v328_v7 = vsel %vm325_vm7, %v322_v56, %v324_v51  ;;  %v314_v11 = vsel %vm313_vm8, %v2178_v32, %v308_v58 }
 0x12e   : > { %v310_v61 = vpop.permute.xlu1 %309  ;;  %v312_v62 = vpop.permute.xlu0 %311 }
 0x12f   : > { %401 = vrot.lane.b32.xlu1 %v327_v59, %s2078_s11  ;;  %425 = vrot.lane.b32.xlu0 %v354_v60, %s2078_s11  ;;  %v316_v3 = vsel %vm313_vm8, %v310_v61, %v312_v62  ;;  %v315_v10 = vsel %vm313_vm8, %v308_v58, %v310_v61 }
 0x132   : > { %v298_v1 = vpop.permute.xlu1 %297  ;;  %v296_v5 = vpop.permute.xlu0 %295 }
 0x133   : > { %399 = vrot.lane.b32.xlu1 %v326_v63, %s2078_s11  ;;  %419 = vrot.lane.b32.xlu0 %v346_v0, %s2078_s11  ;;  %v303_v6 = vsel %vm301_vm9, %v296_v5, %v298_v1 }
 0x136   : > { %v294_v8 = vpop.permute.xlu1 %293  ;;  %v300_v12 = vpop.permute.xlu0 %299 }
 0x137   : > { %395 = vrot.lane.b32.xlu1 %v316_v3, %s2078_s11  ;;  %409 = vrot.lane.b32.xlu0 %v336_v4, %s2078_s11  ;;  %v302_v9 = vsel %vm301_vm9, %v294_v8, %v296_v5  ;;  %v304_v13 = vsel %vm301_vm9, %v298_v1, %v300_v12 }
 0x13a   : > { %v2247_v15 = vpop.permute.xlu0 %377 }
 0x13b   : > { %385 = vrot.lane.b32.xlu1 %v303_v6, %s2078_s11  ;;  %403 = vrot.lane.b32.xlu0 %v328_v7, %s2078_s11  ;;  %v374_v7 = vld [vmem:[%s2868_s1] sm:$0xff] }
 0x13f   : > { %383 = vrot.lane.b32.xlu1 %v302_v9, %s2078_s11  ;;  %393 = vrot.lane.b32.xlu0 %v315_v10, %s2078_s11 }
 0x143   : > { %379 = vrot.lane.b32.xlu1 %v2148_v28, %s2078_s11  ;;  %391 = vrot.lane.b32.xlu0 %v314_v11, %s2078_s11 }
 0x147   : > { %445 = vrot.lane.b32.xlu1 %v2184_v37, %s2078_s11  ;;  %387 = vrot.lane.b32.xlu0 %v304_v13, %s2078_s11 }
 0x14b   : > { %429 = vrot.lane.b32.xlu1 %v352_v44, %s2078_s11  ;;  %375 = vrot.lane.b32.xlu0 %v2887_v2, %s2078_s11 }
 0x14f   : > { %413 = vrot.lane.b32.xlu1 %v334_v53, %s2078_s11  ;;  %437 = vrot.lane.b32.xlu0 %v2182_v36, %s2078_s11 }
 0x153   : > { %397 = vrot.lane.b32.xlu1 %v312_v62, %s2078_s11  ;;  %421 = vrot.lane.b32.xlu0 %v2188_v42, %s2078_s11 }
 0x157   : > { %381 = vrot.lane.b32.xlu1 %v2153_v30, %s2078_s11  ;;  %405 = vrot.lane.b32.xlu0 %v324_v51, %s2078_s11 }
 0x15b   : > { %389 = vrot.lane.b32.xlu0 %v300_v12, %s2078_s11 }
 0x179   : > { %v432_v14 = vpop.permute.xlu1 %431  ;;  %v440_v19 = vpop.permute.xlu0 %439 }
 0x189   : > { %v416_v16 = vpop.permute.xlu1 %415  ;;  %v424_v22 = vpop.permute.xlu0 %423 }
 0x18d   : > { %v2249_v21 = vpop.permute.xlu1 %443 }
 0x191   : > { %v434_v23 = vpop.permute.xlu1 %433 }
 0x192   : > { %v469_v24 = vsel %vm447_vm10, %v432_v14, %v434_v23 }
 0x193   : > { %v2256_v27 = vand.u32 4294901760, %v469_v24 }
 0x195   : > { %v2252_v25 = vpop.permute.xlu1 %427  ;;  %v2254_v26 = vpop.permute.xlu0 %407  ;;  %v2266_v34 = vsub.f32 %v469_v24, %v2256_v27  ;;  %v504_v24 = vsel %vm502_vm11, %v374_v7, 0 }
 0x197   : > { %v2881_v44 = vand.u32 4294901760, %v2266_v34 }
 0x199   : > { %v418_v28 = vpop.permute.xlu1 %417  ;;  %v442_v29 = vpop.permute.xlu0 %441  ;;  %v635_v58 = vsub.f32 %v2266_v34, %v2881_v44 }
 0x19a   : > { %v472_v30 = vsel %vm447_vm10, %v440_v19, %v442_v29  ;;  %v473_v31 = vsel %vm447_vm10, %v442_v29, %v2249_v21  ;;  %v463_v39 = vsel %vm447_vm10, %v416_v16, %v418_v28 }
 0x19b   : > { %v2261_v32 = vand.u32 4294901760, %v473_v31  ;;  %v2263_v33 = vand.u32 4294901760, %v472_v30  ;;  %v2288_v45 = vand.u32 4294901760, %v463_v39  ;;  %v636_v10 = vand.u32 4294901760, %v635_v58 }
 0x19d   : > { %v2269_v35 = vsub.f32 %v473_v31, %v2261_v32  ;;  %v2272_v36 = vsub.f32 %v472_v30, %v2263_v33  ;;  %v2274_v37 = vpop.permute.xlu1 %411  ;;  %v2276_v38 = vpop.permute.xlu0 %435  ;;  %521 = vmatprep.subr.mxu0 %v2261_v32  ;;  %v2313_v59 = vsub.f32 %v463_v39, %v2288_v45 }
 0x19e   : > { %v470_v40 = vsel %vm447_vm10, %v434_v23, %v2276_v38  ;;  %523 = vmatpush1.msra.mxu0 %v2263_v33 }
 0x19f   : > { %v2283_v41 = vand.u32 4294901760, %v470_v40  ;;  %v2886_v42 = vand.u32 4294901760, %v2269_v35  ;;  %v2884_v43 = vand.u32 4294901760, %v2272_v36  ;;  %v2876_v19 = vand.u32 4294901760, %v2313_v59 }
 0x1a1   : > { %v2291_v46 = vsub.f32 %v470_v40, %v2283_v41  ;;  %v402_v47 = vpop.permute.xlu1 %401  ;;  %v426_v48 = vpop.permute.xlu0 %425  ;;  %525 = vmatprep.subr.mxu0 %v2283_v41  ;;  %v617_v49 = vsub.f32 %v2269_v35, %v2886_v42  ;;  %v623_v50 = vsub.f32 %v2272_v36, %v2884_v43 }
 0x1a2   : > { %v466_v51 = vsel %vm447_vm10, %v424_v22, %v426_v48  ;;  %v467_v52 = vsel %vm447_vm10, %v426_v48, %v2252_v25  ;;  %527 = vmatpush1.msra.mxu0 %v2256_v27 }
 0x1a3   : > { %v2304_v53 = vand.u32 4294901760, %v467_v52  ;;  %v2306_v54 = vand.u32 4294901760, %v466_v51  ;;  %v618_v55 = vand.u32 4294901760, %v617_v49  ;;  %v624_v56 = vand.u32 4294901760, %v623_v50 }
 0x1a4   : > { %v2882_v57 = vand.u32 4294901760, %v2291_v46 }
 0x1a5   : > { %v2316_v60 = vsub.f32 %v467_v52, %v2304_v53  ;;  %v2319_v61 = vsub.f32 %v466_v51, %v2306_v54  ;;  %v400_v62 = vpop.permute.xlu1 %399  ;;  %v2321_v63 = vpop.permute.xlu0 %419  ;;  %529 = vmatprep.subr.mxu0 %v2304_v53  ;;  %619 = vmatprep.subr.mxu1 %v618_v55  ;;  %v659_v51 = vsub.f32 %v2313_v59, %v2876_v19 }
 0x1a6   : > { %v457_v0 = vsel %vm447_vm10, %v400_v62, %v402_v47  ;;  %v464_v1 = vsel %vm447_vm10, %v418_v28, %v2321_v63  ;;  %531 = vmatpush1.msra.mxu0 %v2306_v54  ;;  %625 = vmatpush1.msra.mxu1 %v624_v56  ;;  %v629_v3 = vsub.f32 %v2291_v46, %v2882_v57  ;;  %v2384_v56 = vand.u32 4294901760, %v504_v24 }
 0x1a7   : > { %v2331_v4 = vand.u32 4294901760, %v464_v1  ;;  %v2880_v5 = vand.u32 4294901760, %v2316_v60  ;;  %v2878_v6 = vand.u32 4294901760, %v2319_v61  ;;  %v2338_v8 = vand.u32 4294901760, %v457_v0 }
 0x1a8   : > { %v630_v9 = vand.u32 4294901760, %v629_v3 }
 0x1a9   : > { %v2341_v11 = vsub.f32 %v464_v1, %v2331_v4  ;;  %v2343_v12 = vpop.permute.xlu1 %395  ;;  %v410_v13 = vpop.permute.xlu0 %409  ;;  %533 = vmatprep.subr.mxu0 %v2331_v4  ;;  %v641_v14 = vsub.f32 %v2316_v60, %v2880_v5  ;;  %v647_v16 = vsub.f32 %v2319_v61, %v2878_v6  ;;  %v2363_v39 = vsub.f32 %v457_v0, %v2338_v8 }
 0x1aa   : > { %v460_v22 = vsel %vm447_vm10, %v2254_v26, %v410_v13  ;;  %v461_v23 = vsel %vm447_vm10, %v410_v13, %v2274_v37  ;;  %631 = vmatprep.subr.mxu1 %v630_v9  ;;  %535 = vmatpush1.msra.mxu0 %v2288_v45 }
 0x1ab   : > { %v2358_v28 = vand.u32 4294901760, %v461_v23  ;;  %v2360_v29 = vand.u32 4294901760, %v460_v22  ;;  %637 = vmatpush1.msra.mxu1 %v636_v10  ;;  %v642_v30 = vand.u32 4294901760, %v641_v14  ;;  %v648_v31 = vand.u32 4294901760, %v647_v16 }
 0x1ac   : > { %v2877_v40 = vand.u32 4294901760, %v2341_v11  ;;  %v2874_v3 = vand.u32 4294901760, %v2363_v39  ;;  %v660_v10 = vand.u32 4294901760, %v659_v51 }
 0x1ad   : > { %v2367_v26 = vsub.f32 %v461_v23, %v2358_v28  ;;  %v2370_v48 = vsub.f32 %v460_v22, %v2360_v29  ;;  %v386_v49 = vpop.permute.xlu1 %385  ;;  %v2372_v50 = vpop.permute.xlu0 %403  ;;  %537 = vmatprep.subr.mxu0 %v2358_v28  ;;  %643 = vmatprep.subr.mxu1 %v642_v30  ;;  %v2406_v23 = vsub.f32 %v504_v24, %v2384_v56 }
 0x1ae   : > { %v458_v52 = vsel %vm447_vm10, %v402_v47, %v2372_v50  ;;  %539 = vmatpush1.msra.mxu0 %v2360_v29  ;;  %649 = vmatpush1.msra.mxu1 %v648_v31  ;;  %v653_v55 = vsub.f32 %v2341_v11, %v2877_v40 }
 0x1af   : > { %v2386_v58 = vand.u32 4294901760, %v458_v52  ;;  %v2875_v62 = vand.u32 4294901760, %v2367_v26  ;;  %v2873_v0 = vand.u32 4294901760, %v2370_v48 }
 0x1b0   : > { %v654_v1 = vand.u32 4294901760, %v653_v55  ;;  %v683_v55 = vsub.f32 %v2363_v39, %v2874_v3 }
 0x1b1   : > { %v2392_v47 = vsub.f32 %v458_v52, %v2386_v58  ;;  %v384_v7 = vpop.permute.xlu1 %383  ;;  %v394_v9 = vpop.permute.xlu0 %393  ;;  %541 = vmatprep.subr.mxu0 %v2386_v58  ;;  %v665_v13 = vsub.f32 %v2367_v26, %v2875_v62  ;;  %v671_v14 = vsub.f32 %v2370_v48, %v2873_v0 }
 0x1b2   : > { %v451_v16 = vsel %vm447_vm10, %v384_v7, %v386_v49  ;;  %v455_v22 = vsel %vm447_vm10, %v394_v9, %v2343_v12  ;;  %655 = vmatprep.subr.mxu1 %v654_v1  ;;  %543 = vmatpush1.msra.mxu0 %v2338_v8  ;;  %v684_v40 = vand.u32 4294901760, %v683_v55 }
 0x1b3   : > { %v2408_v30 = vand.u32 4294901760, %v455_v22  ;;  %661 = vmatpush1.msra.mxu1 %v660_v10  ;;  %v666_v31 = vand.u32 4294901760, %v665_v13  ;;  %v672_v51 = vand.u32 4294901760, %v671_v14  ;;  %v2879_v52 = vand.u32 4294901760, %v2392_v47 }
 0x1b4   : > { %v2414_v7 = vand.u32 4294901760, %v451_v16 }
 0x1b5   : > { %v2417_v1 = vsub.f32 %v455_v22, %v2408_v30  ;;  %v2419_v0 = vpop.permute.xlu1 %379  ;;  %v392_v24 = vpop.permute.xlu0 %391  ;;  %545 = vmatprep.subr.mxu0 %v2408_v30  ;;  %667 = vmatprep.subr.mxu1 %v666_v31  ;;  %v677_v14 = vsub.f32 %v2392_v47, %v2879_v52  ;;  %v2430_v22 = vand.u32 4294901760, %v2406_v23 }
 0x1b6   : > { %v449_v10 = vsel %vm447_vm10, %v2247_v15, %v2419_v0  ;;  %v454_v13 = vsel %vm447_vm10, %v392_v24, %v394_v9  ;;  %673 = vmatpush1.msra.mxu1 %v672_v51  ;;  %v2438_v6 = vsub.f32 %v451_v16, %v2414_v7 }
 0x1b7   : > { %v2432_v3 = vand.u32 4294901760, %v449_v10  ;;  %v2434_v62 = vand.u32 4294901760, %v454_v13  ;;  %v2883_v31 = vand.u32 4294901760, %v2417_v1  ;;  %v678_v19 = vand.u32 4294901760, %v677_v14 }
 0x1b9   : > { %v2441_v9 = vsub.f32 %v449_v10, %v2432_v3  ;;  %v2444_v51 = vsub.f32 %v454_v13, %v2434_v62  ;;  %v446_v24 = vpop.permute.xlu1 %445  ;;  %v2446_v52 = vpop.permute.xlu0 %387  ;;  %547 = vmatpush1.msra.mxu0 %v2434_v62  ;;  %v689_v5 = vsub.f32 %v2417_v1, %v2883_v31  ;;  %679 = vmatprep.subr.mxu1 %v678_v19  ;;  %v2890_v19 = vand.u32 4294901760, %v2438_v6 }
 0x1ba   : > { %v2454_v55 = vsel %vm447_vm10, %v2249_v21, %v446_v24  ;;  %v452_v16 = vsel %vm447_vm10, %v386_v49, %v2446_v52  ;;  %v592_v10 = vsub.f32 %v2406_v23, %v2430_v22  ;;  %685 = vmatpush1.msra.mxu1 %v684_v40 }
 0x1bb   : > { %v2460_v13 = vand.u32 4294901760, %v452_v16  ;;  %v690_v14 = vand.u32 4294901760, %v689_v5  ;;  %v2885_v44 = vand.u32 4294901760, %v2444_v51  ;;  %v2889_v49 = vand.u32 4294901760, %v2441_v9 }
 0x1bc   : > { %v2479_v24 = vand.u32 4294901760, %v592_v10 }
 0x1bd   : > { %v2464_v57 = vsub.f32 %v452_v16, %v2460_v13  ;;  %v430_v31 = vpop.permute.xlu1 %429  ;;  %v376_v43 = vpop.permute.xlu0 %375  ;;  %549 = vmatprep.subr.mxu0 %v2460_v13  ;;  %691 = vmatprep.subr.mxu1 %v690_v14  ;;  %v695_v21 = vsub.f32 %v2444_v51, %v2885_v44 }
 0x1be   : > { %v2474_v5 = vsel %vm447_vm10, %v2252_v25, %v430_v31  ;;  %v448_v40 = vsel %vm447_vm10, %v376_v43, %v2247_v15  ;;  %551 = vmatpush1.msra.mxu0 %v2414_v7  ;;  %v707_v15 = vsub.f32 %v2438_v6, %v2890_v19  ;;  %v713_v43 = vsub.f32 %v2441_v9, %v2889_v49 }
 0x1bf   : > { %v2481_v16 = vand.u32 4294901760, %v448_v40  ;;  %553 = vmatprep.subr.mxu0 %v2432_v3  ;;  %v696_v14 = vand.u32 4294901760, %v695_v21  ;;  %v2891_v44 = vand.u32 4294901760, %v2464_v57 }
 0x1c1   : > { %v2486_v42 = vsub.f32 %v448_v40, %v2481_v16  ;;  %v414_v2 = vpop.permute.xlu1 %413  ;;  %v438_v25 = vpop.permute.xlu0 %437  ;;  %555 = vmatpush1.msra.mxu0 %v2481_v16  ;;  %697 = vmatpush1.msra.mxu1 %v696_v14  ;;  %v701_v21 = vsub.f32 %v2464_v57, %v2891_v44  ;;  %v2893_v14 = vmov 0.0  }
 0x1c2   : > { %v2497_v31 = vsel %vm447_vm10, %v2274_v37, %v414_v2  ;;  %v2501_v10 = vsel %vm447_vm10, %v2276_v38, %v438_v25  ;;  %778 = vmatprep.subr.mxu0 %v2269_v35  ;;  %594 = vmatmul.mubr.f32.vlgmr.msra.gmra.mxu0 %v2479_v24  ;;  %v708_v25 = vand.u32 4294901760, %v707_v15 }
 0x1c3   : > { %781 = vmatpush1.msra.mxu0 %v2272_v36  ;;  %v2892_v40 = vand.u32 4294901760, %v2486_v42  ;;  %862 = vmatprep.mubr.f32.mxu0 %v2893_v14  ;;  %v702_v2 = vand.u32 4294901760, %v701_v21  ;;  %v714_v21 = vand.u32 4294901760, %v713_v43  ;;  %v2897_v43 = vand.u32 4294901760, %v2266_v34 }
 0x1c4   : > { %784 = vmatprep.subr.mxu0 %v2291_v46 }
 0x1c5   : > { %v398_v37 = vpop.permute.xlu1 %397  ;;  %v422_v38 = vpop.permute.xlu0 %421  ;;  %787 = vmatpush1.msra.mxu0 %v2266_v34  ;;  %v719_v49 = vsub.f32 %v2486_v42, %v2892_v40  ;;  %703 = vmatprep.subr.mxu1 %v702_v2  ;;  %v2901_v34 = vand.u32 4294901760, %v2313_v59 }
 0x1c6   : > { %v2518_v19 = vsel %vm447_vm10, %v2343_v12, %v398_v37  ;;  %v2522_v44 = vsel %vm447_vm10, %v2321_v63, %v422_v38  ;;  %790 = vmatprep.subr.mxu0 %v2316_v60  ;;  %709 = vmatpush1.msra.mxu1 %v708_v25  ;;  %v2894_v63 = vand.u32 4294901760, %v2269_v35  ;;  %v2898_v35 = vand.u32 4294901760, %v2316_v60 }
 0x1c7   : > { %793 = vmatpush1.msra.mxu0 %v2319_v61  ;;  %715 = vmatprep.subr.mxu1 %v714_v21  ;;  %v720_v15 = vand.u32 4294901760, %v719_v49  ;;  %v2896_v49 = vand.u32 4294901760, %v2291_v46  ;;  %v2900_v46 = vand.u32 4294901760, %v2341_v11  ;;  %v2902_v60 = vand.u32 4294901760, %v2367_v26 }
 0x1c8   : > { %796 = vmatprep.subr.mxu0 %v2341_v11  ;;  %v2904_v11 = vand.u32 4294901760, %v2392_v47 }
 0x1c9   : > { %v406_v40 = vpop.permute.xlu0 %405  ;;  %799 = vmatpush1.msra.mxu0 %v2313_v59  ;;  %721 = vmatpush1.msra.mxu1 %v720_v15  ;;  %v2590_v59 = vand.u32 4294901760, %v2454_v55 }
 0x1ca   : > { %v2530_v12 = vsel %vm447_vm10, %v2372_v50, %v406_v40  ;;  %802 = vmatprep.subr.mxu0 %v2367_v26  ;;  %756 = vmatmul.mubr.f32.vlgmr.msra.gmra.mxu1 %v2384_v56  ;;  %v2895_v50 = vand.u32 4294901760, %v2272_v36  ;;  %v2899_v36 = vand.u32 4294901760, %v2319_v61  ;;  %v2903_v61 = vand.u32 4294901760, %v2370_v48 }
 0x1cb   : > { %886 = vmatprep.subr.mxu1 %v2261_v32  ;;  %805 = vmatpush1.msra.mxu0 %v2370_v48  ;;  %v2905_v40 = vand.u32 4294901760, %v2363_v39  ;;  %v2907_v26 = vand.u32 4294901760, %v2444_v51  ;;  %v2910_v48 = vand.u32 4294901760, %v2441_v9 }
 0x1cc   : > { %888 = vmatpush1.msra.mxu1 %v2263_v33  ;;  %808 = vmatprep.subr.mxu0 %v2392_v47 }
 0x1cd   : > { %890 = vmatprep.subr.mxu1 %v2283_v41  ;;  %811 = vmatpush1.msra.mxu0 %v2363_v39  ;;  %v2612_v39 = vand.u32 4294901760, %v2474_v5 }
 0x1ce   : > { %892 = vmatpush1.msra.mxu1 %v2256_v27  ;;  %814 = vmatprep.subr.mxu0 %v2417_v1 }
 0x1cf   : > { %894 = vmatprep.subr.mxu1 %v2304_v53  ;;  %817 = vmatpush1.msra.mxu0 %v2444_v51 }
 0x1d0   : > { %896 = vmatpush1.msra.mxu1 %v2306_v54  ;;  %820 = vmatprep.subr.mxu0 %v2464_v57 }
 0x1d1   : > { %898 = vmatprep.subr.mxu1 %v2331_v4  ;;  %823 = vmatpush1.msra.mxu0 %v2438_v6 }
 0x1d2   : > { %900 = vmatpush1.msra.mxu1 %v2288_v45  ;;  %826 = vmatprep.subr.mxu0 %v2441_v9 }
 0x1d3   : > { %902 = vmatprep.subr.mxu1 %v2358_v28  ;;  %829 = vmatpush1.msra.mxu0 %v2486_v42 }
 0x1d4   : > { %904 = vmatpush1.msra.mxu1 %v2360_v29  ;;  %865 = vmatmul.mubr.f32.vlgmr.msra.gmra.mxu0 %v2406_v23 }
 0x1d5   : > { %906 = vmatprep.subr.mxu1 %v2386_v58  ;;  %980 = vmatprep.subr.mxu0 %v2894_v63 }
 0x1d6   : > { %908 = vmatpush1.msra.mxu1 %v2338_v8  ;;  %984 = vmatpush1.msra.mxu0 %v2895_v50 }
 0x1d7   : > { %910 = vmatprep.subr.mxu1 %v2408_v30  ;;  %988 = vmatprep.subr.mxu0 %v2896_v49 }
 0x1d8   : > { %912 = vmatpush1.msra.mxu1 %v2434_v62  ;;  %992 = vmatpush1.msra.mxu0 %v2897_v43 }
 0x1d9   : > { %914 = vmatprep.subr.mxu1 %v2460_v13  ;;  %996 = vmatprep.subr.mxu0 %v2898_v35 }
 0x1da   : > { %916 = vmatpush1.msra.mxu1 %v2414_v7  ;;  %1000 = vmatpush1.msra.mxu0 %v2899_v36 }
 0x1db   : > { %918 = vmatprep.subr.mxu1 %v2432_v3  ;;  %1004 = vmatprep.subr.mxu0 %v2900_v46  ;;  %v2741_v46 = vld [vmem:[#allocation2] sm:$0xff] }
 0x1dc   : > { %920 = vmatpush1.msra.mxu1 %v2481_v16  ;;  %953 = vmatprep.mubr.f32.mxu1 %v2893_v14 }
 0x1dd   : > { %1008 = vmatpush1.msra.mxu0 %v2901_v34  ;;  %957 = vmatmul.mubr.f32.vlgmr.msra.gmra.mxu1 %v2430_v22 }
 0x1de   : > { %1012 = vmatprep.subr.mxu0 %v2902_v60  ;;  %1104 = vmatprep.subr.mxu1 %v2261_v32  ;;  %v2906_v32 = vand.u32 4294901760, %v2417_v1  ;;  %v382_v1 = vpop.permute.xlu1 %381 }
 0x1df   : > { %1016 = vmatpush1.msra.mxu0 %v2903_v61  ;;  %1106 = vmatpush1.msra.mxu1 %v2263_v33  ;;  %v2599_v33 = vand.u32 4294901760, %v2501_v10 }
 0x1e0   : > { %1020 = vmatprep.subr.mxu0 %v2904_v11  ;;  %1108 = vmatprep.subr.mxu1 %v2283_v41  ;;  %v2908_v41 = vand.u32 4294901760, %v2464_v57  ;;  %v2625_v57 = vand.u32 4294901760, %v2522_v44 }
 0x1e1   : > { %1024 = vmatpush1.msra.mxu0 %v2905_v40  ;;  %1110 = vmatpush1.msra.mxu1 %v2256_v27  ;;  %v2609_v27 = vsub.f32 %v2454_v55, %v2590_v59 }
 0x1e2   : > { %1028 = vmatprep.subr.mxu0 %v2906_v32  ;;  %1112 = vmatprep.subr.mxu1 %v2304_v53  ;;  %v2909_v53 = vand.u32 4294901760, %v2438_v6  ;;  %v2635_v6 = vsub.f32 %v2474_v5, %v2612_v39  ;;  %v2647_v47 = vsub.f32 %v2522_v44, %v2625_v57 }
 0x1e3   : > { %1032 = vmatpush1.msra.mxu0 %v2907_v26  ;;  %1114 = vmatpush1.msra.mxu1 %v2306_v54  ;;  %v2622_v54 = vsub.f32 %v2501_v10, %v2599_v33 }
 0x1e4   : > { %1036 = vmatprep.subr.mxu0 %v2908_v41  ;;  %1116 = vmatprep.subr.mxu1 %v2331_v4  ;;  %v2911_v4 = vand.u32 4294901760, %v2486_v42  ;;  %v390_v42 = vpop.permute.xlu0 %389  ;;  %v1294_v9 = vand.u32 4294901760, %v2635_v6  ;;  %v1301_v55 = vand.u32 4294901760, %v2647_v47 }
 0x1e5   : > { %1040 = vmatpush1.msra.mxu0 %v2909_v53  ;;  %1118 = vmatpush1.msra.mxu1 %v2288_v45  ;;  %v1280_v45 = vand.u32 4294901760, %v2609_v27 }
 0x1e6   : > { %1044 = vmatprep.subr.mxu0 %v2910_v48  ;;  %1120 = vmatprep.subr.mxu1 %v2358_v28  ;;  %v2638_v28 = vand.u32 4294901760, %v2497_v31  ;;  %v1295_v5 = vsub.f32 %v2635_v6, %v1294_v9 }
 0x1e7   : > { %1048 = vmatpush1.msra.mxu0 %v2911_v4  ;;  %1081 = vmatprep.mubr.f32.mxu0 %v2893_v14 }
 0x1e8   : > { %1122 = vmatpush1.msra.mxu1 %v2360_v29  ;;  %1083 = vmatmul.mubr.f32.vlgmr.msra.gmra.mxu0 %v2384_v56  ;;  %v1287_v29 = vand.u32 4294901760, %v2622_v54  ;;  %v2662_v44 = vsub.f32 %v2497_v31, %v2638_v28  ;;  %v1296_v25 = vand.u32 4294901760, %v1295_v5 }
 0x1e9   : > { %1124 = vmatprep.subr.mxu1 %v2386_v58  ;;  %1908 = vmatprep.subr.mxu0 %v2893_v14  ;;  %v2652_v58 = vand.u32 4294901760, %v2530_v12 }
 0x1ea   : > { %1126 = vmatpush1.msra.mxu1 %v2338_v8  ;;  %1909 = vmatpush3.msra.mxu0 %v2590_v59  ;;  %v1281_v8 = vsub.f32 %v2609_v27, %v1280_v45  ;;  %v1288_v51 = vsub.f32 %v2622_v54, %v1287_v29 }
 0x1eb   : > { %1128 = vmatprep.subr.mxu1 %v2408_v30  ;;  %1910 = vmatprep.subr.mxu0 %v2893_v14  ;;  %v453_v30 = vsel %vm447_vm10, %v2446_v52, %v390_v42  ;;  %v450_v52 = vsel %vm447_vm10, %v2419_v0, %v382_v1  ;;  %v1308_v0 = vand.u32 4294901760, %v2662_v44 }
 0x1ec   : > { %1130 = vmatpush1.msra.mxu1 %v2434_v62  ;;  %1911 = vmatpush3.msra.mxu0 %v2599_v33  ;;  %v2669_v62 = vand.u32 4294901760, %v2518_v19  ;;  %v2699_v10 = vand.u32 4294901760, %v450_v52  ;;  %v1289_v2 = vand.u32 4294901760, %v1288_v51 }
 0x1ed   : > { %1132 = vmatprep.subr.mxu1 %v2460_v13  ;;  %1912 = vmatprep.subr.mxu0 %v2893_v14  ;;  %v2683_v13 = vsub.f32 %v2530_v12, %v2652_v58 }
 0x1ee   : > { %1134 = vmatpush1.msra.mxu1 %v2414_v7  ;;  %1913 = vmatpush3.msra.mxu0 %v2612_v39  ;;  %v2685_v7 = vand.u32 4294901760, %v453_v30  ;;  %v2697_v31 = vsub.f32 %v2518_v19, %v2669_v62  ;;  %v1309_v19 = vsub.f32 %v2662_v44, %v1308_v0  ;;  %v2719_v15 = vsub.f32 %v450_v52, %v2699_v10 }
 0x1ef   : > { %1136 = vmatprep.subr.mxu1 %v2432_v3  ;;  %1914 = vmatprep.subr.mxu0 %v2893_v14  ;;  %v1282_v3 = vand.u32 4294901760, %v1281_v8  ;;  %v1315_v37 = vand.u32 4294901760, %v2683_v13 }
 0x1f0   : > { %1138 = vmatpush1.msra.mxu1 %v2481_v16  ;;  %1171 = vmatprep.mubr.f32.mxu1 %v2893_v14  ;;  %v1302_v16 = vsub.f32 %v2647_v47, %v1301_v55  ;;  %v2709_v38 = vsub.f32 %v453_v30, %v2685_v7  ;;  %v1322_v21 = vand.u32 4294901760, %v2697_v31  ;;  %v1310_v49 = vand.u32 4294901760, %v1309_v19 }
 0x1f1   : > { %1915 = vmatpush3.msra.mxu0 %v2625_v57  ;;  %1173 = vmatmul.mubr.f32.vlgmr.msra.gmra.mxu1 %v2384_v56  ;;  %v1316_v63 = vsub.f32 %v2683_v13, %v1315_v37  ;;  %v1336_v35 = vand.u32 4294901760, %v2719_v15 }
 0x1f2   : > { %1916 = vmatprep.subr.mxu0 %v2893_v14  ;;  %1929 = vmatprep.subr.mxu1 %v2893_v14  ;;  %v1303_v12 = vand.u32 4294901760, %v1302_v16  ;;  %v1329_v50 = vand.u32 4294901760, %v2709_v38  ;;  %v1323_v43 = vsub.f32 %v2697_v31, %v1322_v21 }
 0x1f3   : > { %1917 = vmatpush3.msra.mxu0 %v2638_v28  ;;  %1930 = vmatpush3.msra.mxu1 %v1282_v3  ;;  %v1317_v34 = vand.u32 4294901760, %v1316_v63 }
 0x1f4   : > { %1918 = vmatprep.subr.mxu0 %v2893_v14  ;;  %1931 = vmatprep.subr.mxu1 %v2893_v14  ;;  %v1330_v36 = vsub.f32 %v2709_v38, %v1329_v50  ;;  %v1324_v60 = vand.u32 4294901760, %v1323_v43 }
 0x1f5   : > { %1919 = vmatpush3.msra.mxu0 %v2652_v58  ;;  %1932 = vmatpush3.msra.mxu1 %v1289_v2 }
 0x1f6   : > { %1920 = vmatprep.subr.mxu0 %v2893_v14  ;;  %1933 = vmatprep.subr.mxu1 %v2893_v14  ;;  %v1331_v61 = vand.u32 4294901760, %v1330_v36 }
 0x1f7   : > { %1921 = vmatpush3.msra.mxu0 %v2669_v62  ;;  %1934 = vmatpush3.msra.mxu1 %v1296_v25 }
 0x1f8   : > { %1922 = vmatprep.subr.mxu0 %v2893_v14  ;;  %1935 = vmatprep.subr.mxu1 %v2893_v14 }
 0x1f9   : > { %1923 = vmatpush3.msra.mxu0 %v2685_v7  ;;  %1936 = vmatpush3.msra.mxu1 %v1303_v12 }
 0x1fa   : > { %1924 = vmatprep.subr.mxu0 %v2893_v14  ;;  %1937 = vmatprep.subr.mxu1 %v2893_v14  ;;  %v1337_v14 = vsub.f32 %v2719_v15, %v1336_v35 }
 0x1fb   : > { %1925 = vmatpush3.msra.mxu0 %v2699_v10  ;;  %1938 = vmatpush3.msra.mxu1 %v1310_v49 }
 0x1fc   : > { %1926 = vmatprep.mubr.msk.f32.mxu0 %vm2079_vm12, %v2741_v46  ;;  %1939 = vmatprep.subr.mxu1 %v2741_v46 }
 0x1fd   : > { %1950 = vmatprep.subr.mxu0 %v2741_v46  ;;  %1927 = vmatmul.mubr.f32.vlgmr.msra.gmra.mxu0 %v2479_v24  ;;  %v1338_v24 = vand.u32 4294901760, %v1337_v14 }
 0x1fe   : > { %1940 = vmatpush3.msra.mxu1 %v1317_v34  ;;  %1951 = vmatpush3.msra.mxu0 %v2609_v27 }
 0x1ff   : > { %1941 = vmatprep.subr.mxu1 %v2741_v46  ;;  %1952 = vmatprep.subr.mxu0 %v2741_v46 }
 0x200   : > { %1942 = vmatpush3.msra.mxu1 %v1324_v60  ;;  %1953 = vmatpush3.msra.mxu0 %v2622_v54 }
 0x201   : > { %1943 = vmatprep.subr.mxu1 %v2741_v46  ;;  %1954 = vmatprep.subr.mxu0 %v2741_v46 }
 0x202   : > { %1944 = vmatpush3.msra.mxu1 %v1331_v61  ;;  %1955 = vmatpush3.msra.mxu0 %v2635_v6 }
 0x203   : > { %1945 = vmatprep.subr.mxu1 %v2741_v46  ;;  %1956 = vmatprep.subr.mxu0 %v2741_v46 }
 0x204   : > { %1946 = vmatpush3.msra.mxu1 %v1338_v24  ;;  %1947 = vmatprep.mubr.msk.f32.mxu1 %vm2079_vm12, %v2741_v46 }
 0x205   : > { %1957 = vmatpush3.msra.mxu0 %v2647_v47  ;;  %1948 = vmatmul.mubr.f32.vlgmr.msra.gmra.mxu1 %v2384_v56 }
 0x206   : > { %1958 = vmatprep.subr.mxu0 %v2741_v46  ;;  %1971 = vmatprep.subr.mxu1 %v2741_v46 }
 0x207   : > { %1959 = vmatpush3.msra.mxu0 %v2662_v44  ;;  %1972 = vmatpush3.msra.mxu1 %v2590_v59 }
 0x208   : > { %1960 = vmatprep.subr.mxu0 %v2741_v46  ;;  %1973 = vmatprep.subr.mxu1 %v2741_v46 }
 0x209   : > { %1961 = vmatpush3.msra.mxu0 %v2683_v13  ;;  %1974 = vmatpush3.msra.mxu1 %v2599_v33 }
 0x20a   : > { %1962 = vmatprep.subr.mxu0 %v2741_v46  ;;  %1975 = vmatprep.subr.mxu1 %v2741_v46 }
 0x20b   : > { %1963 = vmatpush3.msra.mxu0 %v2697_v31  ;;  %1976 = vmatpush3.msra.mxu1 %v2612_v39 }
 0x20c   : > { %1964 = vmatprep.subr.mxu0 %v2741_v46  ;;  %1977 = vmatprep.subr.mxu1 %v2741_v46 }
 0x20d   : > { %1965 = vmatpush3.msra.mxu0 %v2709_v38  ;;  %1978 = vmatpush3.msra.mxu1 %v2625_v57 }
 0x20e   : > { %1966 = vmatprep.subr.mxu0 %v2741_v46  ;;  %1979 = vmatprep.subr.mxu1 %v2741_v46 }
 0x20f   : > { %1967 = vmatpush3.msra.mxu0 %v2719_v15  ;;  %1968 = vmatprep.mubr.msk.f32.mxu0 %vm2079_vm12, %v2741_v46 }
 0x210   : > { %1980 = vmatpush3.msra.mxu1 %v2638_v28  ;;  %1969 = vmatmul.mubr.f32.vlgmr.msra.gmra.mxu0 %v2406_v23 }
 0x211   : > { %1981 = vmatprep.subr.mxu1 %v2741_v46  ;;  %1992 = vmatprep.subr.mxu0 %v2741_v46 }
 0x212   : > { %1982 = vmatpush3.msra.mxu1 %v2652_v58  ;;  %1993 = vmatpush3.msra.mxu0 %v1280_v45 }
 0x213   : > { %1983 = vmatprep.subr.mxu1 %v2741_v46  ;;  %1994 = vmatprep.subr.mxu0 %v2741_v46 }
 0x214   : > { %1984 = vmatpush3.msra.mxu1 %v2669_v62  ;;  %1995 = vmatpush3.msra.mxu0 %v1287_v29 }
 0x215   : > { %1985 = vmatprep.subr.mxu1 %v2741_v46  ;;  %1996 = vmatprep.subr.mxu0 %v2741_v46 }
 0x216   : > { %1986 = vmatpush3.msra.mxu1 %v2685_v7  ;;  %1997 = vmatpush3.msra.mxu0 %v1294_v9 }
 0x217   : > { %1987 = vmatprep.subr.mxu1 %v2741_v46  ;;  %1998 = vmatprep.subr.mxu0 %v2741_v46 }
 0x218   : > { %1988 = vmatpush3.msra.mxu1 %v2699_v10  ;;  %1989 = vmatprep.mubr.msk.f32.mxu1 %vm2079_vm12, %v2741_v46 }
 0x219   : > { %1999 = vmatpush3.msra.mxu0 %v1301_v55  ;;  %1990 = vmatmul.mubr.f32.vlgmr.msra.gmra.mxu1 %v2430_v22 }
 0x21a   : > { %2000 = vmatprep.subr.mxu0 %v2741_v46  ;;  %2013 = vmatprep.subr.mxu1 %v2741_v46 }
 0x21b   : > { %2001 = vmatpush3.msra.mxu0 %v1308_v0  ;;  %2014 = vmatpush3.msra.mxu1 %v2590_v59 }
 0x21c   : > { %2002 = vmatprep.subr.mxu0 %v2741_v46  ;;  %2015 = vmatprep.subr.mxu1 %v2741_v46 }
 0x21d   : > { %2003 = vmatpush3.msra.mxu0 %v1315_v37  ;;  %2016 = vmatpush3.msra.mxu1 %v2599_v33 }
 0x21e   : > { %2004 = vmatprep.subr.mxu0 %v2741_v46  ;;  %2017 = vmatprep.subr.mxu1 %v2741_v46 }
 0x21f   : > { %2005 = vmatpush3.msra.mxu0 %v1322_v21  ;;  %2018 = vmatpush3.msra.mxu1 %v2612_v39 }
 0x220   : > { %2006 = vmatprep.subr.mxu0 %v2741_v46  ;;  %2019 = vmatprep.subr.mxu1 %v2741_v46 }
 0x221   : > { %2007 = vmatpush3.msra.mxu0 %v1329_v50  ;;  %2020 = vmatpush3.msra.mxu1 %v2625_v57 }
 0x222   : > { %2008 = vmatprep.subr.mxu0 %v2741_v46  ;;  %2021 = vmatprep.subr.mxu1 %v2741_v46 }
 0x223   : > { %2009 = vmatpush3.msra.mxu0 %v1336_v35  ;;  %2010 = vmatprep.mubr.msk.f32.mxu0 %vm2079_vm12, %v2741_v46 }
 0x224   : > { %2022 = vmatpush3.msra.mxu1 %v2638_v28  ;;  %2011 = vmatmul.mubr.f32.vlgmr.msra.gmra.mxu0 %v2384_v56 }
 0x225   : > { %2023 = vmatprep.subr.mxu1 %v2741_v46  ;;  %2031 = vmatprep.mubr.msk.f32.mxu1 %vm2079_vm12, %v2741_v46 }
 0x226   : > { %2024 = vmatpush3.msra.mxu1 %v2652_v58 }
 0x227   : > { %2025 = vmatprep.subr.mxu1 %v2741_v46 }
 0x228   : > { %2026 = vmatpush3.msra.mxu1 %v2669_v62 }
 0x229   : > { %2027 = vmatprep.subr.mxu1 %v2741_v46 }
 0x22a   : > { %2028 = vmatpush3.msra.mxu1 %v2685_v7 }
 0x22b   : > { %2029 = vmatprep.subr.mxu1 %v2741_v46 }
 0x22c   : > { %2030 = vmatpush3.msra.mxu1 %v2699_v10 }
 0x22d   : > { %2032 = vmatmul.mubr.f32.vlgmr.msra.gmra.mxu1 %v2384_v56 }
 0x282   : > { %v595_v23 = vpop.f32.mrf.mxu0 }
 0x284   : > { %v597_v22 = vpop.f32.mrf.mxu0 }
 0x28a   : > { %v757_v11 = vpop.f32.mrf.mxu1 }
 0x28b   : > { %v758_v26 = vadd.f32 %v757_v11, %v595_v23 }
 0x28c   : > { %v759_v40 = vpop.f32.mrf.mxu1 }
 0x28d   : > { %v760_v27 = vadd.f32 %v759_v40, %v597_v22 }
 0x294   : > { %v866_v59 = vpop.f32.mrf.mxu0 }
 0x295   : > { %v867_v39 = vadd.f32 %v866_v59, %v758_v26 }
 0x296   : > { %v868_v32 = vpop.f32.mrf.mxu0 }
 0x297   : > { %v869_v48 = vadd.f32 %v868_v32, %v760_v27 }
 0x29d   : > { %v958_v33 = vpop.f32.mrf.mxu1 }
 0x29e   : > { %v959_v54 = vadd.f32 %v958_v33, %v867_v39 }
 0x29f   : > { %v960_v53 = vpop.f32.mrf.mxu1 }
 0x2a0   : > { %v961_v4 = vadd.f32 %v960_v53, %v869_v48 }
 0x2a8   : > { %v1084_v41 = vpop.f32.mrf.mxu0 }
 0x2a9   : > { %v1085_v45 = vadd.f32 %v1084_v41, %v959_v54 }
 0x2aa   : > { %v1086_v57 = vpop.f32.mrf.mxu0 }
 0x2ab   : > { %v1087_v6 = vadd.f32 %v1086_v57, %v961_v4 }
 0x2b1   : > { %v1174_v56 = vpop.f32.mrf.mxu1 }
 0x2b2   : > { %v1175_v28 = vadd.f32 %v1174_v56, %v1085_v45 }
 0x2b3   : > { %v1176_v42 = vpop.f32.mrf.mxu1 }
 0x2b4   : > { %1749 = vst [vmem:[%s231_s16] sm:$0xff] %v1175_v28  ;;  %v1177_v29 = vadd.f32 %v1176_v42, %v1087_v6  ;;  %v1729_v3 = vmul.f32 %v1175_v28, %v2140_v17 }
 0x2b6   : > { %1750 = vst [vmem:[%s231_s16 + $0x8] sm:$0xff] %v1177_v29  ;;  %v1730_v5 = vmul.f32 %v1177_v29, %v2142_v18  ;;  %v1737_v38 = vmul.f32 %v1729_v3, %v1175_v28 }
 0x2b8   : > { %v1738_v16 = vmul.f32 %v1730_v5, %v1177_v29  ;;  %v1732_v19 = vadd.f32 %v1730_v5, %v1729_v3 }
 0x2ba   : > { %v1740_v12 = vadd.f32 %v1738_v16, %v1737_v38 }
 0x2bd   : > { %v1259_v47 = vpop.f32.mrf.mxu0 }
 0x2bf   : > { %v1928_v1 = vpop.f32.mrf.mxu0 }
 0x2c5   : > { %v1375_v58 = vpop.f32.mrf.mxu1 }
 0x2c6   : > { %v1376_v55 = vadd.f32 %v1375_v58, %v1259_v47 }
 0x2c7   : > { %v1949_v8 = vpop.f32.mrf.mxu1 }
 0x2d0   : > { %v1465_v9 = vpop.f32.mrf.mxu0 }
 0x2d1   : > { %v1466_v13 = vadd.f32 %v1465_v9, %v1376_v55 }
 0x2d2   : > { %v1970_v44 = vpop.f32.mrf.mxu0 }
 0x2d9   : > { %v1547_v30 = vpop.f32.mrf.mxu1 }
 0x2da   : > { %v1548_v7 = vadd.f32 %v1547_v30, %v1466_v13 }
 0x2db   : > { %v1991_v62 = vpop.f32.mrf.mxu1 }
 0x2e4   : > { %v1645_v51 = vpop.f32.mrf.mxu0 }
 0x2e5   : > { %v1646_v0 = vadd.f32 %v1645_v51, %v1548_v7 }
 0x2e6   : > { %v2012_v52 = vpop.f32.mrf.mxu0 }
 0x2ed   : > { %v1725_v31 = vpop.f32.mrf.mxu1 }
 0x2ee   : > { %v1726_v10 = vadd.f32 %v1725_v31, %v1646_v0 }
 0x2ef   : > { %v2033_v2 = vpop.f32.mrf.mxu1 }
 0x2f0   : > { %1751 = vst.msk [vmem:[%s231_s16 + $0x10] sm:$0xff] %vm283_vm1, %v1726_v10  ;;  %v1731_v37 = vmul.f32 %v1726_v10, %v2144_v20 }
 0x2f2   : > { %v1733_v25 = vsel %vm283_vm1, %v1731_v37, 0.0  ;;  %v1739_v21 = vmul.f32 %v1731_v37, %v1726_v10 }
 0x2f3   : > { %v1734_v15 = vadd.f32 %v1733_v25, %v1732_v19 }
 0x2f4   : > { %v1741_v18 = vsel %vm283_vm1, %v1739_v21, 0.0 }
 0x2f5   : > { %1735 = vadd.xlane.f32.xlu0 %v1734_v15  ;;  %v1742_v17 = vadd.f32 %v1741_v18, %v1740_v12 }
 0x2f7   : > { %1743 = vadd.xlane.f32.xlu1 %v1742_v17 }
 0x37e   : > { %v1736_v20 = vpop.xlane.xlu0 %1735 }
 0x380   : > { %v1744_v63 = vpop.xlane.xlu1 %1743 }
 0x381   : > { %v1746_v50 = vsel %vm1745_vm13, %v1736_v20, %v1744_v63 }
 0x382   : > { %1748 = vst.msk [vmem:[%s235_s22] sm:$0xff] %vm1747_vm14, %v1746_v50 }
 0x383 PF: > { %s16_s18 = sadd.s32 1, %s2065_s18  }
 0x384   : > { %p13_p4 = scmp.ge.s32.totalorder %s16_s18, 4  }
 0x386   :  { %15 = sbr.rel (!%p13_p4) target bundleno = 1 (0x1), region = 78 }

</bundles_post_ra>
